<compile_context>
chip_gen: v7x
topology: tpu7x:2x2x1
jax: 0.10.0
libtpu: 0.0.40
codegen_flags: <defaults>
</compile_context>

<pallas_src>
import functools

import jax
import jax.numpy as jnp
from jax.experimental import pallas as pl
from jax.experimental.pallas import tpu as pltpu


def _round_up(x, m):
    return (x + m - 1) // m * m


# --------------------------------------------------------------------------
# Pallas kernels: fused  out = act( X @ W + b )
# --------------------------------------------------------------------------
def _mm_bias_act_kernel_kloop(x_ref, w_ref, b_ref, o_ref, acc_ref, *, apply_relu):
    """3-D grid (M, N, K); K trailing reduction axis, f32 VMEM accumulator."""
    @pl.when(pl.program_id(2) == 0)
    def _():
        acc_ref[...] = jnp.zeros_like(acc_ref)

    acc_ref[...] += jnp.dot(x_ref[...], w_ref[...],
                            preferred_element_type=jnp.float32)

    @pl.when(pl.program_id(2) == pl.num_programs(2) - 1)
    def _():
        out = acc_ref[...] + b_ref[...].astype(jnp.float32)
        if apply_relu:
            out = jnp.maximum(out, 0.0)
        o_ref[...] = out.astype(o_ref.dtype)


def _mm_bias_act_kernel_single(x_ref, w_ref, b_ref, o_ref, *, apply_relu):
    """2-D grid (M, N); whole K in one block -> no scratch, no output revisit."""
    out = jnp.dot(x_ref[...], w_ref[...], preferred_element_type=jnp.float32)
    out = out + b_ref[...].astype(jnp.float32)
    if apply_relu:
        out = jnp.maximum(out, 0.0)
    o_ref[...] = out.astype(o_ref.dtype)


def matmul_bias_act(x, w, b, *, apply_relu, out_dtype=jnp.bfloat16):
    """x: (M, K), w: (K, N), b: (N,)  ->  (M, N) in `out_dtype`.

    Operands are cast to bf16 (f32 accumulation).  M/K/N are zero-padded as
    needed so the grid tiles divide evenly; padding is sliced off on return.
    """
    M, K = x.shape
    K2, N = w.shape
    assert K == K2 and b.shape == (N,)

    x = x.astype(jnp.bfloat16)
    w = w.astype(jnp.bfloat16)
    b2 = b.astype(jnp.float32).reshape(1, N)

    # ---- K: single full-width block when small, else 128-multiple tiles -----
    if K < 128:
        Kp = _round_up(K, 32)       # full-dim block is legal; saves HBM on conv1
        Kt = Kp
    else:
        Kp = _round_up(K, 128)
        Kt = 128
        for cand in (1024, 768, 512, 384, 256, 128):
            if Kp % cand == 0:
                Kt = cand
                break
    if Kp != K:
        x = jnp.pad(x, ((0, 0), (0, Kp - K)))
        w = jnp.pad(w, ((0, Kp - K), (0, 0)))

    # ---- N: lane-dense 128-multiples; 256-wide tiles fill the v6e/v7x MXU ----
    Np = _round_up(N, 128)
    if Np != N:
        w = jnp.pad(w, ((0, 0), (0, Np - N)))
        b2 = jnp.pad(b2, ((0, 0), (0, Np - N)))
    Nt = 256 if Np % 256 == 0 else 128

    # ---- M: sublane multiple, tiles up to 512 rows ---------------------------
    Mp = _round_up(M, 8)
    Mt = min(Mp, 512)
    Mp = _round_up(Mp, Mt)
    if Mp != M:
        x = jnp.pad(x, ((0, Mp - M), (0, 0)))

    k_steps = Kp // Kt

    cost = pl.CostEstimate(
        flops=2 * Mp * Np * Kp,
        transcendentals=0,
        bytes_accessed=(Mp * Kp * 2 + Kp * Np * 2
                        + Mp * Np * jnp.dtype(out_dtype).itemsize + Np * 4),
    )

    if k_steps == 1:
        out = pl.pallas_call(
            functools.partial(_mm_bias_act_kernel_single, apply_relu=apply_relu),
            out_shape=jax.ShapeDtypeStruct((Mp, Np), out_dtype),
            grid_spec=pltpu.PrefetchScalarGridSpec(
                num_scalar_prefetch=0,
                grid=(Mp // Mt, Np // Nt),
                in_specs=[
                    pl.BlockSpec((Mt, Kt), lambda i, j: (i, 0)),
                    pl.BlockSpec((Kt, Nt), lambda i, j: (0, j)),
                    pl.BlockSpec((1, Nt), lambda i, j: (0, j)),
                ],
                out_specs=pl.BlockSpec((Mt, Nt), lambda i, j: (i, j)),
            ),
            compiler_params=pltpu.CompilerParams(
                dimension_semantics=("parallel", "parallel"),
                vmem_limit_bytes=40 << 20,
            ),
            cost_estimate=cost,
        )(x, w, b2)
    else:
        out = pl.pallas_call(
            functools.partial(_mm_bias_act_kernel_kloop, apply_relu=apply_relu),
            out_shape=jax.ShapeDtypeStruct((Mp, Np), out_dtype),
            grid_spec=pltpu.PrefetchScalarGridSpec(
                num_scalar_prefetch=0,
                grid=(Mp // Mt, Np // Nt, k_steps),
                in_specs=[
                    pl.BlockSpec((Mt, Kt), lambda i, j, k: (i, k)),
                    pl.BlockSpec((Kt, Nt), lambda i, j, k: (k, j)),
                    pl.BlockSpec((1, Nt), lambda i, j, k: (0, j)),
                ],
                out_specs=pl.BlockSpec((Mt, Nt), lambda i, j, k: (i, j)),
                scratch_shapes=[pltpu.VMEM((Mt, Nt), jnp.float32)],
            ),
            compiler_params=pltpu.CompilerParams(
                dimension_semantics=("parallel", "parallel", "arbitrary"),
                vmem_limit_bytes=40 << 20,
            ),
            cost_estimate=cost,
        )(x, w, b2)

    return out[:M, :N]


# --------------------------------------------------------------------------
# Conv2d(k=3, stride=2, pad=1) via im2col + fused Pallas matmul
# --------------------------------------------------------------------------
def _im2col(x_nhwc, k=3, stride=2, pad=1):
    """x: (N, H, W, C) -> cols (N*OH*OW, k*k*C) with (kh, kw, Cin) patch order."""
    N, H, W, C = x_nhwc.shape
    xp = jnp.pad(x_nhwc, ((0, 0), (pad, pad), (pad, pad), (0, 0)))
    OH = (H + 2 * pad - k) // stride + 1
    OW = (W + 2 * pad - k) // stride + 1
    patches = []
    for kh in range(k):
        for kw in range(k):
            patches.append(
                xp[:, kh:kh + stride * OH:stride, kw:kw + stride * OW:stride, :]
            )
    cols = jnp.stack(patches, axis=3)           # (N, OH, OW, k*k, C)
    return cols.reshape(N * OH * OW, k * k * C), OH, OW


# TODO(synk): fuse the 3x3/stride-2 patch extraction into the Pallas kernel
# (parity-split NHWC planes + in-VMEM taps) to avoid materializing the 9x
# im2col expansion in HBM for very large images.
def conv2d_relu(x_nhwc, w_mat, b, *, apply_relu=True):
    """PyTorch-semantics Conv2d(k=3, s=2, p=1) + ReLU.

    w_mat is the pre-transposed weight (k*k*Cin, Cout), bf16.
    """
    N = x_nhwc.shape[0]
    Cout = w_mat.shape[1]
    cols, OH, OW = _im2col(x_nhwc)
    y = matmul_bias_act(cols, w_mat, b, apply_relu=apply_relu,
                        out_dtype=jnp.bfloat16)
    return y.reshape(N, OH, OW, Cout)


# --------------------------------------------------------------------------
# Parameters (deterministic synthetic init, pre-transformed for the kernels)
# --------------------------------------------------------------------------
def init_params(key, in_channels, img_shape):
    chans = [in_channels, 128, 256, 512, 1024]
    params = {}
    for i in range(4):
        key, k1, k2 = jax.random.split(key, 3)
        cin, cout = chans[i], chans[i + 1]
        w = jax.random.normal(k1, (cout, cin, 3, 3), jnp.float32) * 0.02
        # (Cout, Cin, kh, kw) -> (kh, kw, Cin, Cout) -> (9*Cin, Cout), bf16 once.
        params[f"w{i}"] = (jnp.transpose(w, (2, 3, 1, 0))
                           .reshape(9 * cin, cout).astype(jnp.bfloat16))
        params[f"b{i}"] = jax.random.normal(k2, (cout,), jnp.float32) * 0.02

    out_s = img_shape // 16
    linear_size = out_s * out_s * 1024
    key, k1, k2 = jax.random.split(key, 3)
    # PyTorch fc weight layout: (1, linear_size) over NCHW-flatten order.
    fc_w = jax.random.normal(k1, (1, linear_size), jnp.float32) * 0.02
    fc_b = jax.random.normal(k2, (1,), jnp.float32) * 0.02
    # Permute columns from NCHW-flatten (c*HW + h*W + w) to NHWC-flatten
    # (h*W*C + w*C + c) so the forward pass never transposes the activation,
    # then zero-pad the single output column to 128 lanes for dense stores.
    fc_w_nhwc = (fc_w.reshape(1, 1024, out_s, out_s)
                 .transpose(0, 2, 3, 1).reshape(linear_size))
    fc_w_pad = jnp.zeros((linear_size, 128), jnp.float32).at[:, 0].set(fc_w_nhwc)
    fc_b_pad = jnp.zeros((128,), jnp.float32).at[0].set(fc_b[0])
    params["fc_w"] = fc_w_pad.astype(jnp.bfloat16)
    params["fc_b"] = fc_b_pad
    return params, linear_size


# --------------------------------------------------------------------------
# Forward pass (mirrors Descriminator.forward)
# --------------------------------------------------------------------------
def discriminator_forward(params, x_nchw, linear_size):
    x = jnp.transpose(x_nchw, (0, 2, 3, 1)).astype(jnp.bfloat16)   # NCHW -> NHWC once
    for i in range(4):
        x = conv2d_relu(x, params[f"w{i}"], params[f"b{i}"], apply_relu=True)
    # Flatten directly in NHWC order; fc_w columns were permuted at init to match
    # PyTorch's view(-1, linear_size) over NCHW exactly.
    n = x.shape[0]
    x = x.reshape(n, linear_size)
    # TODO(synk): for tiny spatial sizes (out_s == 1) conv4 + fc could be fused
    # into a single kernel to avoid two sub-8-row launches.
    out = matmul_bias_act(x, params["fc_w"], params["fc_b"],
                          apply_relu=False, out_dtype=jnp.float32)
    return out[:, :1]                                               # (N, 1)


if __name__ == "__main__":
    batch, in_channels, img_shape = 2, 3, 16        # 16 -> 8 -> 4 -> 2 -> 1 spatial
    key = jax.random.PRNGKey(0)
    kp, kx = jax.random.split(key)
    params, linear_size = init_params(kp, in_channels, img_shape)
    x = jax.random.normal(kx, (batch, in_channels, img_shape, img_shape), jnp.float32)

    fwd = jax.jit(functools.partial(discriminator_forward, linear_size=linear_size))
    out = jax.block_until_ready(fwd(params, x))
    assert out.shape == (batch, 1), out.shape
    assert bool(jnp.all(jnp.isfinite(out)))
    print("KERNEL_OK")
</pallas_src>

<mosaic_0001>
module attributes {stable_mosaic.version = 11 : i64} {
  func.func @_mm_bias_act_kernel_single(%arg0: i32, %arg1: i32, %arg2: memref<128x32xbf16, #tpu.memory_space<vmem>>, %arg3: memref<32x128xbf16, #tpu.memory_space<vmem>>, %arg4: memref<1x128xf32, #tpu.memory_space<vmem>>, %arg5: memref<128x128xbf16, #tpu.memory_space<vmem>>) attributes {dimension_semantics = [#tpu.dimension_semantics<parallel>, #tpu.dimension_semantics<parallel>], iteration_bounds = array<i64: 1, 1>, scalar_prefetch = 0 : i64, scratch_operands = 0 : i64, tpu.core_type = #tpu.core_type<tc>, window_params = [{transform_indices = @transform_0, window_bounds = array<i64: 128, 32>}, {transform_indices = @transform_1, window_bounds = array<i64: 32, 128>}, {transform_indices = @transform_2, window_bounds = array<i64: 1, 128>}, {transform_indices = @transform_3, window_bounds = array<i64: 128, 128>}]} {
    %c0 = arith.constant 0 : index
    %c0_0 = arith.constant 0 : index
    %0 = vector.load %arg2[%c0, %c0_0] : memref<128x32xbf16, #tpu.memory_space<vmem>>, vector<128x32xbf16>
    %c0_1 = arith.constant 0 : index
    %c0_2 = arith.constant 0 : index
    %1 = vector.load %arg3[%c0_1, %c0_2] : memref<32x128xbf16, #tpu.memory_space<vmem>>, vector<32x128xbf16>
    %cst = arith.constant dense<0.000000e+00> : vector<128x128xf32>
    %2 = tpu.matmul %0, %1, %cst {dimension_numbers = #tpu.dot_dimension_numbers<[1], [0], [0], [1], [0, 0, 1, 1], [], []>} : vector<128x32xbf16>, vector<32x128xbf16>, vector<128x128xf32> -> vector<128x128xf32>
    %c0_3 = arith.constant 0 : index
    %c0_4 = arith.constant 0 : index
    %3 = vector.load %arg4[%c0_3, %c0_4] : memref<1x128xf32, #tpu.memory_space<vmem>>, vector<1x128xf32>
    %4 = vector.broadcast %3 : vector<1x128xf32> to vector<128x128xf32>
    %5 = arith.addf %2, %4 : vector<128x128xf32>
    %cst_5 = arith.constant 0.000000e+00 : f32
    %6 = vector.broadcast %cst_5 : f32 to vector<128x128xf32>
    %7 = arith.maximumf %5, %6 : vector<128x128xf32>
    %8 = arith.truncf %7 : vector<128x128xf32> to vector<128x128xbf16>
    %c0_6 = arith.constant 0 : index
    %c0_7 = arith.constant 0 : index
    %9 = vector.load %arg5[%c0_6, %c0_7] : memref<128x128xbf16, #tpu.memory_space<vmem>>, vector<128x128xbf16>
    tpu.vector_store %arg5[%c0_6, %c0_7], %8 {strides = array<i32>} : memref<128x128xbf16, #tpu.memory_space<vmem>>, vector<128x128xbf16>,
    return
  }
  func.func @transform_0(%arg0: i32, %arg1: i32) -> (i32, i32) {
    %c0_i32 = arith.constant 0 : i32
    %c0_i32_0 = arith.constant 0 : i32
    return %arg0, %c0_i32 : i32, i32
  }
  func.func @transform_1(%arg0: i32, %arg1: i32) -> (i32, i32) {
    %c0_i32 = arith.constant 0 : i32
    %c0_i32_0 = arith.constant 0 : i32
    return %c0_i32, %arg1 : i32, i32
  }
  func.func @transform_2(%arg0: i32, %arg1: i32) -> (i32, i32) {
    %c0_i32 = arith.constant 0 : i32
    %c0_i32_0 = arith.constant 0 : i32
    return %c0_i32, %arg1 : i32, i32
  }
  func.func @transform_3(%arg0: i32, %arg1: i32) -> (i32, i32) {
    %c0_i32 = arith.constant 0 : i32
    return %arg0, %arg1 : i32, i32
  }
}

module attributes {stable_mosaic.version = 11 : i64} {
  func.func @_mm_bias_act_kernel_kloop(%arg0: i32, %arg1: i32, %arg2: i32, %arg3: memref<32x384xbf16, #tpu.memory_space<vmem>>, %arg4: memref<384x256xbf16, #tpu.memory_space<vmem>>, %arg5: memref<1x256xf32, #tpu.memory_space<vmem>>, %arg6: memref<32x256xbf16, #tpu.memory_space<vmem>>, %arg7: memref<32x256xf32, #tpu.memory_space<vmem>>) attributes {dimension_semantics = [#tpu.dimension_semantics<parallel>, #tpu.dimension_semantics<parallel>, #tpu.dimension_semantics<arbitrary>], iteration_bounds = array<i64: 1, 1, 3>, scalar_prefetch = 0 : i64, scratch_operands = 1 : i64, tpu.core_type = #tpu.core_type<tc>, window_params = [{transform_indices = @transform_0, window_bounds = array<i64: 32, 384>}, {transform_indices = @transform_1, window_bounds = array<i64: 384, 256>}, {transform_indices = @transform_2, window_bounds = array<i64: 1, 256>}, {transform_indices = @transform_3, window_bounds = array<i64: 32, 256>}]} {
    %c0_i32 = arith.constant 0 : i32
    %0 = arith.cmpi eq, %arg2, %c0_i32 : i32
    %1 = arith.extui %0 : i1 to i32
    %c0_i32_0 = arith.constant 0 : i32
    %2 = arith.cmpi ne, %1, %c0_i32_0 : i32
    scf.if %2 {
      %cst_9 = arith.constant 0.000000e+00 : f32
      %12 = vector.broadcast %cst_9 : f32 to vector<32x256xf32>
      %c0_10 = arith.constant 0 : index
      %c0_11 = arith.constant 0 : index
      %13 = vector.load %arg7[%c0_10, %c0_11] : memref<32x256xf32, #tpu.memory_space<vmem>>, vector<32x256xf32>
      tpu.vector_store %arg7[%c0_10, %c0_11], %12 {strides = array<i32>} : memref<32x256xf32, #tpu.memory_space<vmem>>, vector<32x256xf32>,
    } else {
    }
    %c0 = arith.constant 0 : index
    %c0_1 = arith.constant 0 : index
    %3 = vector.load %arg7[%c0, %c0_1] : memref<32x256xf32, #tpu.memory_space<vmem>>, vector<32x256xf32>
    %c0_2 = arith.constant 0 : index
    %c0_3 = arith.constant 0 : index
    %4 = vector.load %arg3[%c0_2, %c0_3] : memref<32x384xbf16, #tpu.memory_space<vmem>>, vector<32x384xbf16>
    %c0_4 = arith.constant 0 : index
    %c0_5 = arith.constant 0 : index
    %5 = vector.load %arg4[%c0_4, %c0_5] : memref<384x256xbf16, #tpu.memory_space<vmem>>, vector<384x256xbf16>
    %cst = arith.constant dense<0.000000e+00> : vector<32x256xf32>
    %6 = tpu.matmul %4, %5, %cst {dimension_numbers = #tpu.dot_dimension_numbers<[1], [0], [0], [1], [0, 0, 1, 1], [], []>} : vector<32x384xbf16>, vector<384x256xbf16>, vector<32x256xf32> -> vector<32x256xf32>
    %7 = arith.addf %3, %6 : vector<32x256xf32>
    %c0_6 = arith.constant 0 : index
    %c0_7 = arith.constant 0 : index
    %8 = vector.load %arg7[%c0_6, %c0_7] : memref<32x256xf32, #tpu.memory_space<vmem>>, vector<32x256xf32>
    tpu.vector_store %arg7[%c0_6, %c0_7], %7 {strides = array<i32>} : memref<32x256xf32, #tpu.memory_space<vmem>>, vector<32x256xf32>,
    %c2_i32 = arith.constant 2 : i32
    %9 = arith.cmpi eq, %arg2, %c2_i32 : i32
    %10 = arith.extui %9 : i1 to i32
    %c0_i32_8 = arith.constant 0 : i32
    %11 = arith.cmpi ne, %10, %c0_i32_8 : i32
    scf.if %11 {
      %c0_9 = arith.constant 0 : index
      %c0_10 = arith.constant 0 : index
      %12 = vector.load %arg7[%c0_9, %c0_10] : memref<32x256xf32, #tpu.memory_space<vmem>>, vector<32x256xf32>
      %c0_11 = arith.constant 0 : index
      %c0_12 = arith.constant 0 : index
      %13 = vector.load %arg5[%c0_11, %c0_12] : memref<1x256xf32, #tpu.memory_space<vmem>>, vector<1x256xf32>
      %14 = vector.broadcast %13 : vector<1x256xf32> to vector<32x256xf32>
      %15 = arith.addf %12, %14 : vector<32x256xf32>
      %cst_13 = arith.constant 0.000000e+00 : f32
      %16 = vector.broadcast %cst_13 : f32 to vector<32x256xf32>
      %17 = arith.maximumf %15, %16 : vector<32x256xf32>
      %18 = arith.truncf %17 : vector<32x256xf32> to vector<32x256xbf16>
      %c0_14 = arith.constant 0 : index
      %c0_15 = arith.constant 0 : index
      %19 = vector.load %arg6[%c0_14, %c0_15] : memref<32x256xbf16, #tpu.memory_space<vmem>>, vector<32x256xbf16>
      tpu.vector_store %arg6[%c0_14, %c0_15], %18 {strides = array<i32>} : memref<32x256xbf16, #tpu.memory_space<vmem>>, vector<32x256xbf16>,
    } else {
    }
    return
  }
  func.func @transform_0(%arg0: i32, %arg1: i32, %arg2: i32) -> (i32, i32) {
    %c0_i32 = arith.constant 0 : i32
    return %arg0, %arg2 : i32, i32
  }
  func.func @transform_1(%arg0: i32, %arg1: i32, %arg2: i32) -> (i32, i32) {
    %c0_i32 = arith.constant 0 : i32
    return %arg2, %arg1 : i32, i32
  }
  func.func @transform_2(%arg0: i32, %arg1: i32, %arg2: i32) -> (i32, i32) {
    %c0_i32 = arith.constant 0 : i32
    %c0_i32_0 = arith.constant 0 : i32
    return %c0_i32, %arg1 : i32, i32
  }
  func.func @transform_3(%arg0: i32, %arg1: i32, %arg2: i32) -> (i32, i32) {
    %c0_i32 = arith.constant 0 : i32
    return %arg0, %arg1 : i32, i32
  }
}

module attributes {stable_mosaic.version = 11 : i64} {
  func.func @_mm_bias_act_kernel_kloop(%arg0: i32, %arg1: i32, %arg2: i32, %arg3: memref<8x768xbf16, #tpu.memory_space<vmem>>, %arg4: memref<768x256xbf16, #tpu.memory_space<vmem>>, %arg5: memref<1x256xf32, #tpu.memory_space<vmem>>, %arg6: memref<8x256xbf16, #tpu.memory_space<vmem>>, %arg7: memref<8x256xf32, #tpu.memory_space<vmem>>) attributes {dimension_semantics = [#tpu.dimension_semantics<parallel>, #tpu.dimension_semantics<parallel>, #tpu.dimension_semantics<arbitrary>], iteration_bounds = array<i64: 1, 2, 3>, scalar_prefetch = 0 : i64, scratch_operands = 1 : i64, tpu.core_type = #tpu.core_type<tc>, window_params = [{transform_indices = @transform_0, window_bounds = array<i64: 8, 768>}, {transform_indices = @transform_1, window_bounds = array<i64: 768, 256>}, {transform_indices = @transform_2, window_bounds = array<i64: 1, 256>}, {transform_indices = @transform_3, window_bounds = array<i64: 8, 256>}]} {
    %c0_i32 = arith.constant 0 : i32
    %0 = arith.cmpi eq, %arg2, %c0_i32 : i32
    %1 = arith.extui %0 : i1 to i32
    %c0_i32_0 = arith.constant 0 : i32
    %2 = arith.cmpi ne, %1, %c0_i32_0 : i32
    scf.if %2 {
      %cst_9 = arith.constant 0.000000e+00 : f32
      %12 = vector.broadcast %cst_9 : f32 to vector<8x256xf32>
      %c0_10 = arith.constant 0 : index
      %c0_11 = arith.constant 0 : index
      %13 = vector.load %arg7[%c0_10, %c0_11] : memref<8x256xf32, #tpu.memory_space<vmem>>, vector<8x256xf32>
      tpu.vector_store %arg7[%c0_10, %c0_11], %12 {strides = array<i32>} : memref<8x256xf32, #tpu.memory_space<vmem>>, vector<8x256xf32>,
    } else {
    }
    %c0 = arith.constant 0 : index
    %c0_1 = arith.constant 0 : index
    %3 = vector.load %arg7[%c0, %c0_1] : memref<8x256xf32, #tpu.memory_space<vmem>>, vector<8x256xf32>
    %c0_2 = arith.constant 0 : index
    %c0_3 = arith.constant 0 : index
    %4 = vector.load %arg3[%c0_2, %c0_3] : memref<8x768xbf16, #tpu.memory_space<vmem>>, vector<8x768xbf16>
    %c0_4 = arith.constant 0 : index
    %c0_5 = arith.constant 0 : index
    %5 = vector.load %arg4[%c0_4, %c0_5] : memref<768x256xbf16, #tpu.memory_space<vmem>>, vector<768x256xbf16>
    %cst = arith.constant dense<0.000000e+00> : vector<8x256xf32>
    %6 = tpu.matmul %4, %5, %cst {dimension_numbers = #tpu.dot_dimension_numbers<[1], [0], [0], [1], [0, 0, 1, 1], [], []>} : vector<8x768xbf16>, vector<768x256xbf16>, vector<8x256xf32> -> vector<8x256xf32>
    %7 = arith.addf %3, %6 : vector<8x256xf32>
    %c0_6 = arith.constant 0 : index
    %c0_7 = arith.constant 0 : index
    %8 = vector.load %arg7[%c0_6, %c0_7] : memref<8x256xf32, #tpu.memory_space<vmem>>, vector<8x256xf32>
    tpu.vector_store %arg7[%c0_6, %c0_7], %7 {strides = array<i32>} : memref<8x256xf32, #tpu.memory_space<vmem>>, vector<8x256xf32>,
    %c2_i32 = arith.constant 2 : i32
    %9 = arith.cmpi eq, %arg2, %c2_i32 : i32
    %10 = arith.extui %9 : i1 to i32
    %c0_i32_8 = arith.constant 0 : i32
    %11 = arith.cmpi ne, %10, %c0_i32_8 : i32
    scf.if %11 {
      %c0_9 = arith.constant 0 : index
      %c0_10 = arith.constant 0 : index
      %12 = vector.load %arg7[%c0_9, %c0_10] : memref<8x256xf32, #tpu.memory_space<vmem>>, vector<8x256xf32>
      %c0_11 = arith.constant 0 : index
      %c0_12 = arith.constant 0 : index
      %13 = vector.load %arg5[%c0_11, %c0_12] : memref<1x256xf32, #tpu.memory_space<vmem>>, vector<1x256xf32>
      %14 = vector.broadcast %13 : vector<1x256xf32> to vector<8x256xf32>
      %15 = arith.addf %12, %14 : vector<8x256xf32>
      %cst_13 = arith.constant 0.000000e+00 : f32
      %16 = vector.broadcast %cst_13 : f32 to vector<8x256xf32>
      %17 = arith.maximumf %15, %16 : vector<8x256xf32>
      %18 = arith.truncf %17 : vector<8x256xf32> to vector<8x256xbf16>
      %c0_14 = arith.constant 0 : index
      %c0_15 = arith.constant 0 : index
      %19 = vector.load %arg6[%c0_14, %c0_15] : memref<8x256xbf16, #tpu.memory_space<vmem>>, vector<8x256xbf16>
      tpu.vector_store %arg6[%c0_14, %c0_15], %18 {strides = array<i32>} : memref<8x256xbf16, #tpu.memory_space<vmem>>, vector<8x256xbf16>,
    } else {
    }
    return
  }
  func.func @transform_0(%arg0: i32, %arg1: i32, %arg2: i32) -> (i32, i32) {
    %c0_i32 = arith.constant 0 : i32
    return %arg0, %arg2 : i32, i32
  }
  func.func @transform_1(%arg0: i32, %arg1: i32, %arg2: i32) -> (i32, i32) {
    %c0_i32 = arith.constant 0 : i32
    return %arg2, %arg1 : i32, i32
  }
  func.func @transform_2(%arg0: i32, %arg1: i32, %arg2: i32) -> (i32, i32) {
    %c0_i32 = arith.constant 0 : i32
    %c0_i32_0 = arith.constant 0 : i32
    return %c0_i32, %arg1 : i32, i32
  }
  func.func @transform_3(%arg0: i32, %arg1: i32, %arg2: i32) -> (i32, i32) {
    %c0_i32 = arith.constant 0 : i32
    return %arg0, %arg1 : i32, i32
  }
}

module attributes {stable_mosaic.version = 11 : i64} {
  func.func @_mm_bias_act_kernel_single(%arg0: i32, %arg1: i32, %arg2: memref<8x1024xbf16, #tpu.memory_space<vmem>>, %arg3: memref<1024x128xbf16, #tpu.memory_space<vmem>>, %arg4: memref<1x128xf32, #tpu.memory_space<vmem>>, %arg5: memref<8x128xf32, #tpu.memory_space<vmem>>) attributes {dimension_semantics = [#tpu.dimension_semantics<parallel>, #tpu.dimension_semantics<parallel>], iteration_bounds = array<i64: 1, 1>, scalar_prefetch = 0 : i64, scratch_operands = 0 : i64, tpu.core_type = #tpu.core_type<tc>, window_params = [{transform_indices = @transform_0, window_bounds = array<i64: 8, 1024>}, {transform_indices = @transform_1, window_bounds = array<i64: 1024, 128>}, {transform_indices = @transform_2, window_bounds = array<i64: 1, 128>}, {transform_indices = @transform_3, window_bounds = array<i64: 8, 128>}]} {
    %c0 = arith.constant 0 : index
    %c0_0 = arith.constant 0 : index
    %0 = vector.load %arg2[%c0, %c0_0] : memref<8x1024xbf16, #tpu.memory_space<vmem>>, vector<8x1024xbf16>
    %c0_1 = arith.constant 0 : index
    %c0_2 = arith.constant 0 : index
    %1 = vector.load %arg3[%c0_1, %c0_2] : memref<1024x128xbf16, #tpu.memory_space<vmem>>, vector<1024x128xbf16>
    %cst = arith.constant dense<0.000000e+00> : vector<8x128xf32>
    %2 = tpu.matmul %0, %1, %cst {dimension_numbers = #tpu.dot_dimension_numbers<[1], [0], [0], [1], [0, 0, 1, 1], [], []>} : vector<8x1024xbf16>, vector<1024x128xbf16>, vector<8x128xf32> -> vector<8x128xf32>
    %c0_3 = arith.constant 0 : index
    %c0_4 = arith.constant 0 : index
    %3 = vector.load %arg4[%c0_3, %c0_4] : memref<1x128xf32, #tpu.memory_space<vmem>>, vector<1x128xf32>
    %4 = vector.broadcast %3 : vector<1x128xf32> to vector<8x128xf32>
    %5 = arith.addf %2, %4 : vector<8x128xf32>
    %c0_5 = arith.constant 0 : index
    %c0_6 = arith.constant 0 : index
    %6 = vector.load %arg5[%c0_5, %c0_6] : memref<8x128xf32, #tpu.memory_space<vmem>>, vector<8x128xf32>
    tpu.vector_store %arg5[%c0_5, %c0_6], %5 {strides = array<i32>} : memref<8x128xf32, #tpu.memory_space<vmem>>, vector<8x128xf32>,
    return
  }
  func.func @transform_0(%arg0: i32, %arg1: i32) -> (i32, i32) {
    %c0_i32 = arith.constant 0 : i32
    %c0_i32_0 = arith.constant 0 : i32
    return %arg0, %c0_i32 : i32, i32
  }
  func.func @transform_1(%arg0: i32, %arg1: i32) -> (i32, i32) {
    %c0_i32 = arith.constant 0 : i32
    %c0_i32_0 = arith.constant 0 : i32
    return %c0_i32, %arg1 : i32, i32
  }
  func.func @transform_2(%arg0: i32, %arg1: i32) -> (i32, i32) {
    %c0_i32 = arith.constant 0 : i32
    %c0_i32_0 = arith.constant 0 : i32
    return %c0_i32, %arg1 : i32, i32
  }
  func.func @transform_3(%arg0: i32, %arg1: i32) -> (i32, i32) {
    %c0_i32 = arith.constant 0 : i32
    return %arg0, %arg1 : i32, i32
  }
}

module attributes {stable_mosaic.version = 11 : i64} {
  func.func @_mm_bias_act_kernel_kloop(%arg0: i32, %arg1: i32, %arg2: i32, %arg3: memref<8x768xbf16, #tpu.memory_space<vmem>>, %arg4: memref<768x256xbf16, #tpu.memory_space<vmem>>, %arg5: memref<1x256xf32, #tpu.memory_space<vmem>>, %arg6: memref<8x256xbf16, #tpu.memory_space<vmem>>, %arg7: memref<8x256xf32, #tpu.memory_space<vmem>>) attributes {dimension_semantics = [#tpu.dimension_semantics<parallel>, #tpu.dimension_semantics<parallel>, #tpu.dimension_semantics<arbitrary>], iteration_bounds = array<i64: 1, 4, 6>, scalar_prefetch = 0 : i64, scratch_operands = 1 : i64, tpu.core_type = #tpu.core_type<tc>, window_params = [{transform_indices = @transform_0, window_bounds = array<i64: 8, 768>}, {transform_indices = @transform_1, window_bounds = array<i64: 768, 256>}, {transform_indices = @transform_2, window_bounds = array<i64: 1, 256>}, {transform_indices = @transform_3, window_bounds = array<i64: 8, 256>}]} {
    %c0_i32 = arith.constant 0 : i32
    %0 = arith.cmpi eq, %arg2, %c0_i32 : i32
    %1 = arith.extui %0 : i1 to i32
    %c0_i32_0 = arith.constant 0 : i32
    %2 = arith.cmpi ne, %1, %c0_i32_0 : i32
    scf.if %2 {
      %cst_9 = arith.constant 0.000000e+00 : f32
      %12 = vector.broadcast %cst_9 : f32 to vector<8x256xf32>
      %c0_10 = arith.constant 0 : index
      %c0_11 = arith.constant 0 : index
      %13 = vector.load %arg7[%c0_10, %c0_11] : memref<8x256xf32, #tpu.memory_space<vmem>>, vector<8x256xf32>
      tpu.vector_store %arg7[%c0_10, %c0_11], %12 {strides = array<i32>} : memref<8x256xf32, #tpu.memory_space<vmem>>, vector<8x256xf32>,
    } else {
    }
    %c0 = arith.constant 0 : index
    %c0_1 = arith.constant 0 : index
    %3 = vector.load %arg7[%c0, %c0_1] : memref<8x256xf32, #tpu.memory_space<vmem>>, vector<8x256xf32>
    %c0_2 = arith.constant 0 : index
    %c0_3 = arith.constant 0 : index
    %4 = vector.load %arg3[%c0_2, %c0_3] : memref<8x768xbf16, #tpu.memory_space<vmem>>, vector<8x768xbf16>
    %c0_4 = arith.constant 0 : index
    %c0_5 = arith.constant 0 : index
    %5 = vector.load %arg4[%c0_4, %c0_5] : memref<768x256xbf16, #tpu.memory_space<vmem>>, vector<768x256xbf16>
    %cst = arith.constant dense<0.000000e+00> : vector<8x256xf32>
    %6 = tpu.matmul %4, %5, %cst {dimension_numbers = #tpu.dot_dimension_numbers<[1], [0], [0], [1], [0, 0, 1, 1], [], []>} : vector<8x768xbf16>, vector<768x256xbf16>, vector<8x256xf32> -> vector<8x256xf32>
    %7 = arith.addf %3, %6 : vector<8x256xf32>
    %c0_6 = arith.constant 0 : index
    %c0_7 = arith.constant 0 : index
    %8 = vector.load %arg7[%c0_6, %c0_7] : memref<8x256xf32, #tpu.memory_space<vmem>>, vector<8x256xf32>
    tpu.vector_store %arg7[%c0_6, %c0_7], %7 {strides = array<i32>} : memref<8x256xf32, #tpu.memory_space<vmem>>, vector<8x256xf32>,
    %c5_i32 = arith.constant 5 : i32
    %9 = arith.cmpi eq, %arg2, %c5_i32 : i32
    %10 = arith.extui %9 : i1 to i32
    %c0_i32_8 = arith.constant 0 : i32
    %11 = arith.cmpi ne, %10, %c0_i32_8 : i32
    scf.if %11 {
      %c0_9 = arith.constant 0 : index
      %c0_10 = arith.constant 0 : index
      %12 = vector.load %arg7[%c0_9, %c0_10] : memref<8x256xf32, #tpu.memory_space<vmem>>, vector<8x256xf32>
      %c0_11 = arith.constant 0 : index
      %c0_12 = arith.constant 0 : index
      %13 = vector.load %arg5[%c0_11, %c0_12] : memref<1x256xf32, #tpu.memory_space<vmem>>, vector<1x256xf32>
      %14 = vector.broadcast %13 : vector<1x256xf32> to vector<8x256xf32>
      %15 = arith.addf %12, %14 : vector<8x256xf32>
      %cst_13 = arith.constant 0.000000e+00 : f32
      %16 = vector.broadcast %cst_13 : f32 to vector<8x256xf32>
      %17 = arith.maximumf %15, %16 : vector<8x256xf32>
      %18 = arith.truncf %17 : vector<8x256xf32> to vector<8x256xbf16>
      %c0_14 = arith.constant 0 : index
      %c0_15 = arith.constant 0 : index
      %19 = vector.load %arg6[%c0_14, %c0_15] : memref<8x256xbf16, #tpu.memory_space<vmem>>, vector<8x256xbf16>
      tpu.vector_store %arg6[%c0_14, %c0_15], %18 {strides = array<i32>} : memref<8x256xbf16, #tpu.memory_space<vmem>>, vector<8x256xbf16>,
    } else {
    }
    return
  }
  func.func @transform_0(%arg0: i32, %arg1: i32, %arg2: i32) -> (i32, i32) {
    %c0_i32 = arith.constant 0 : i32
    return %arg0, %arg2 : i32, i32
  }
  func.func @transform_1(%arg0: i32, %arg1: i32, %arg2: i32) -> (i32, i32) {
    %c0_i32 = arith.constant 0 : i32
    return %arg2, %arg1 : i32, i32
  }
  func.func @transform_2(%arg0: i32, %arg1: i32, %arg2: i32) -> (i32, i32) {
    %c0_i32 = arith.constant 0 : i32
    %c0_i32_0 = arith.constant 0 : i32
    return %c0_i32, %arg1 : i32, i32
  }
  func.func @transform_3(%arg0: i32, %arg1: i32, %arg2: i32) -> (i32, i32) {
    %c0_i32 = arith.constant 0 : i32
    return %arg0, %arg1 : i32, i32
  }
}

</mosaic_0001>

<bundles_post_ra>
// kernel: discriminator_forward.5
= control target key start
LH: loop header
LB: loop body
LE: loop exit
PB: predicated region body
PF: predicated region fallthrough
CT: control target
= control target key end

     0   :  { %8 = vsyncpa [#allocation3], 0  ;;  %s496_s12 = smov [#allocation2]   ;;  %s591_s0 = inlined_call_operand.vmem [shape: bf16[128,32], index: 0, kind: input, shape index: {}]   ;;  %s592_s1 = inlined_call_operand.vmem [shape: bf16[32,128], index: 1, kind: input, shape index: {}]   ;;  %s593_s2 = inlined_call_operand.hbm [shape: f32[1,128], index: 2, kind: input, shape index: {}]   ;;  %s594_s3 = inlined_call_operand.vmem [shape: bf16[128,128], index: 3, kind: output, shape index: {}]  }
   0x1   :  { %s19_s13 = sshll.u32 %s496_s12, 4  ;;  %s472_s16 = scalar_lea.hbm %s593_s2, 16  ;;  %s20_s13 = int_to_ptr.vmem [resolvable:$true] %s19_s13 }
   0x2   :  { %p473_p0 = scmp.ne.s32.totalorder %s593_s2, %s472_s16  ;;  %p476_p1 = scmp.lt.u32.totalorder %s472_s16, %s593_s2 }
   0x4   :  { %p478_p2 = pnand %p476_p1, %p473_p0 }
   0x6   :  { %481 = shalt.err (!%p478_p2)
}
   0x7   :  { %s482_s21 = scalar_lea.vmem %s20_s13, 16  ;;  %s486_s22 = scalar_lea.vmem %s20_s13, 32 }
   0x8   :  { %p483_p3 = scmp.ne.s32.totalorder %s20_s13, %s482_s21  ;;  %p487_p4 = scmp.lt.s32.totalorder %s20_s13, %s20_s13 }
   0x9   :  { %p488_p5 = scmp.lt.s32.totalorder %s486_s22, %s482_s21 }
   0xb   :  { %p489_p6 = por %p488_p5, %p487_p4 }
   0xd   :  { %p490_p7 = pnand %p489_p6, %p483_p3 }
   0xf   :  { %493 = shalt.err (!%p490_p7)
}
  0x10   :  { %22 = dma.hbm_to_vmem [thread:$0]  %s593_s2, 16, %s20_s13, [#allocation3]  }
  0x11   :  { %494 = dma.done.wait [#allocation3], 16  }
  0x12   :  { %495 = vsyncadd [#allocation3], 4294967280  ;;  %v462_v0 = vld [vmem:[%s592_s1] sm:$0xff]   ;;  %v463_v1 = vld [vmem:[%s592_s1 + $0x8] sm:$0xff]   ;;  %vm106_vm0 = vcmask 261120  }
  0x13   :  { %437 = vmatprep.subr.bf16.mxu0 %v462_v0  ;;  %457 = vmatprep.subr.bf16.mxu1 %v462_v0  ;;  %v464_v2 = vld [vmem:[%s591_s0] sm:$0xff]   ;;  %v466_v4 = vld [vmem:[%s591_s0 + $0x8] sm:$0xff]   ;;  %v468_v6 = vld [vmem:[%s591_s0 + $0x10] sm:$0xff]  }
  0x14   :  { %438 = vmatpush3.bf16.msra.mxu0 %v462_v0  ;;  %459 = vmatpush3.bf16.msra.mxu1 %v462_v0  ;;  %v465_v3 = vld [vmem:[%s591_s0 + $0x20] sm:$0xff]   ;;  %v467_v5 = vld [vmem:[%s591_s0 + $0x28] sm:$0xff]   ;;  %v469_v7 = vld [vmem:[%s591_s0 + $0x30] sm:$0xff]  }
  0x15   :  { %439 = vmatprep.subr.bf16.mxu0 %v463_v1  ;;  %458 = vmatprep.subr.bf16.mxu1 %v463_v1  ;;  %v470_v8 = vld [vmem:[%s591_s0 + $0x18] sm:$0xff]   ;;  %v329_v10 = vld [vmem:[#allocation2] ss:$0 sm:$0xff] }
  0x16   :  { %441 = vmatprep.mubr.msk.bf16.mxu0 %vm106_vm0, %v464_v2  ;;  %449 = vmatprep.mubr.msk.bf16.mxu1 %vm106_vm0, %v465_v3  ;;  %v471_v9 = vld [vmem:[%s591_s0 + $0x38] sm:$0xff]  }
  0x18   :  { %440 = vmatpush3.bf16.msra.mxu0 %v463_v1  ;;  %460 = vmatpush3.bf16.msra.mxu1 %v463_v1 }
  0x1b   :  { %442 = vmatmul.mubr.msk.bf16.vlgmr.msra.gmra.mrb[0].mxu0 %vm106_vm0, %v466_v4  ;;  %450 = vmatmul.mubr.msk.bf16.vlgmr.msra.gmra.mrb[0].mxu1 %vm106_vm0, %v467_v5 }
  0x1c   :  { %445 = vmatprep.mubr.msk.bf16.mxu0 %vm106_vm0, %v468_v6  ;;  %453 = vmatprep.mubr.msk.bf16.mxu1 %vm106_vm0, %v469_v7 }
  0x23   :  { %446 = vmatmul.mubr.msk.bf16.gmra.mrb[4].mxu0 %vm106_vm0, %v470_v8  ;;  %454 = vmatmul.mubr.msk.bf16.gmra.mrb[4].mxu1 %vm106_vm0, %v471_v9 }
  0xee   :  { %v443_v11 = vpop.f32.mrb[0].mxu0  ;;  %v451_v12 = vpop.f32.mrb[0].mxu1 }
  0xef   :  { %v174_v13 = vadd.f32 %v443_v11, %v329_v10  ;;  %v206_v14 = vadd.f32 %v451_v12, %v329_v10  ;;  %v165_v15 = vpop.f32.mrb[1].mxu0  ;;  %v197_v16 = vpop.f32.mrb[1].mxu1 }
  0xf0   :  { %v166_v17 = vadd.f32 %v329_v10, %v165_v15  ;;  %v198_v18 = vadd.f32 %v329_v10, %v197_v16  ;;  %v444_v19 = vpop.f32.mrb[2].mxu0  ;;  %v452_v20 = vpop.f32.mrb[2].mxu1 }
  0xf1   :  { %v177_v21 = vadd.f32 %v444_v19, %v329_v10  ;;  %v209_v22 = vadd.f32 %v452_v20, %v329_v10  ;;  %v168_v23 = vpop.f32.mrb[3].mxu0  ;;  %v200_v24 = vpop.f32.mrb[3].mxu1  ;;  %v230_v27 = vmax.f32 %v174_v13, 0.0  ;;  %v238_v28 = vmax.f32 %v206_v14, 0.0 }
  0xf2   :  { %v169_v25 = vadd.f32 %v329_v10, %v168_v23  ;;  %v201_v26 = vadd.f32 %v329_v10, %v200_v24  ;;  %v228_v31 = vmax.f32 %v166_v17, 0.0  ;;  %v236_v32 = vmax.f32 %v198_v18, 0.0 }
  0xf3   :  { %v231_v29 = vmax.f32 %v177_v21, 0.0  ;;  %v239_v30 = vmax.f32 %v209_v22, 0.0 }
  0xf4   :  { %v229_v33 = vmax.f32 %v169_v25, 0.0  ;;  %v237_v34 = vmax.f32 %v201_v26, 0.0 }
  0xf5   :  { %v388_v35 = vpack.c.bf16 %v231_v29, %v230_v27  ;;  %v408_v36 = vpack.c.bf16 %v239_v30, %v238_v28 }
  0xf6   :  { %v383_v37 = vpack.c.bf16 %v229_v33, %v228_v31  ;;  %v403_v38 = vpack.c.bf16 %v237_v34, %v236_v32  ;;  %v447_v39 = vpop.f32.mrb[4].mxu0  ;;  %v455_v40 = vpop.f32.mrb[4].mxu1 }
  0xf7   :  { %420 = vst [vmem:[%s594_s3 + $0x8] sm:$0xff] %v388_v35   ;;  %424 = vst [vmem:[%s594_s3 + $0x28] sm:$0xff] %v408_v36   ;;  %v190_v41 = vadd.f32 %v447_v39, %v329_v10  ;;  %v222_v42 = vadd.f32 %v455_v40, %v329_v10  ;;  %v181_v43 = vpop.f32.mrb[5].mxu0  ;;  %v213_v44 = vpop.f32.mrb[5].mxu1 }
  0xf8   :  { %384 = vst [vmem:[%s594_s3] sm:$0xff] %v383_v37   ;;  %423 = vst [vmem:[%s594_s3 + $0x20] sm:$0xff] %v403_v38   ;;  %v182_v45 = vadd.f32 %v329_v10, %v181_v43  ;;  %v214_v46 = vadd.f32 %v329_v10, %v213_v44  ;;  %v448_v47 = vpop.f32.mrb[6].mxu0  ;;  %v456_v48 = vpop.f32.mrb[6].mxu1 }
  0xf9   :  { %v193_v49 = vadd.f32 %v448_v47, %v329_v10  ;;  %v225_v50 = vadd.f32 %v456_v48, %v329_v10  ;;  %v184_v51 = vpop.f32.mrb[7].mxu0  ;;  %v216_v52 = vpop.f32.mrb[7].mxu1  ;;  %v234_v55 = vmax.f32 %v190_v41, 0.0  ;;  %v242_v56 = vmax.f32 %v222_v42, 0.0 }
  0xfa   :  { %v185_v53 = vadd.f32 %v329_v10, %v184_v51  ;;  %v217_v54 = vadd.f32 %v329_v10, %v216_v52  ;;  %v232_v59 = vmax.f32 %v182_v45, 0.0  ;;  %v240_v60 = vmax.f32 %v214_v46, 0.0 }
  0xfb   :  { %v235_v57 = vmax.f32 %v193_v49, 0.0  ;;  %v243_v58 = vmax.f32 %v225_v50, 0.0 }
  0xfc   :  { %v233_v61 = vmax.f32 %v185_v53, 0.0  ;;  %v241_v62 = vmax.f32 %v217_v54, 0.0 }
  0xfd   :  { %v398_v63 = vpack.c.bf16 %v235_v57, %v234_v55  ;;  %v418_v0 = vpack.c.bf16 %v243_v58, %v242_v56 }
  0xfe   :  { %v393_v1 = vpack.c.bf16 %v233_v61, %v232_v59  ;;  %v413_v2 = vpack.c.bf16 %v241_v62, %v240_v60 }
  0xff   :  { %422 = vst [vmem:[%s594_s3 + $0x18] sm:$0xff] %v398_v63   ;;  %426 = vst [vmem:[%s594_s3 + $0x38] sm:$0xff] %v418_v0  }
 0x100   :  { %421 = vst [vmem:[%s594_s3 + $0x10] sm:$0xff] %v393_v1   ;;  %425 = vst [vmem:[%s594_s3 + $0x30] sm:$0xff] %v413_v2  }
 0x101   :  { %328 = vsyncpa [#allocation3], 1 }

// kernel: discriminator_forward.6
= control target key start
LH: loop header
LB: loop body
LE: loop exit
PB: predicated region body
PF: predicated region fallthrough
CT: control target
= control target key end

     0   :  { %8 = vsyncpa [#allocation5], 0  ;;  %s1611_s0 = inlined_call_operand.vmem [shape: bf16[32,1152], index: 0, kind: input, shape index: {}]   ;;  %s1612_s1 = inlined_call_operand.hbm [shape: bf16[1152,256], index: 1, kind: input, shape index: {}]   ;;  %s1613_s2 = inlined_call_operand.hbm [shape: f32[1,256], index: 2, kind: input, shape index: {}]   ;;  %s1614_s3 = inlined_call_operand.vmem [shape: bf16[32,256], index: 3, kind: output, shape index: {}]  }
   0x1   :  { %10 = vsyncpa [#allocation5 + $0x1], 0 }
   0x2   :  { %11 = vsyncpa [#allocation7], 0  ;;  %s1381_s12 = smov 0   ;;  %s1383_s13 = smov 0  }
   0x3   :  { %s1385_s14 = smov 0   ;;  %s1387_s15 = smov 0  }
   0x4   :  { %s1389_s16 = smov 0   ;;  %s1391_s17 = smov 0  }
   0x5 LB: > { %s997_s18 = sadd.s32 4294967295, %s1353_s17   ;;  %s29_s19 = sadd.s32 1, %s1349_s16  ;;  %s1353_s17 = sphi %s1391_s17, %s17_s17   ;;  %s1349_s16 = sphi %s1389_s16, %s1634_s16   ;;  %s1345_s15 = sphi %s1387_s15, %s1633_s15   ;;  %s1341_s14 = sphi %s1385_s14, %s1632_s14   ;;  %s1337_s13 = sphi %s1383_s13, %s1631_s13   ;;  %s1333_s12 = sphi %s1381_s12, %s1630_s12  }
   0x6   : > { %p30_p0 = scmp.ge.s32.totalorder %s29_s19, 3  ;;  %s45_s20 = sadd.s32 1, %s1341_s14 }
   0x7   : > { %p52_p1 = scmp.ne.s32.totalorder %s1341_s14, %s1337_s13  ;;  %p53_p2 = scmp.eq.s32.totalorder %s1353_s17, 0 }
   0x8   : > { %s1636_s19 = smov (%p30_p0, %s29_s19), 0  ;;  %p86_p4 = scmp.ne.s32.totalorder %s1337_s13, %s1333_s12 }
   0x9   : > { %p1417_p3 = por %p53_p2, %p52_p1  ;;  %s41_s22 = ssub.s32 %s1349_s16, %s1636_s19 }
   0xa   : > { %p1424_p5 = scmp.eq.s32.totalorder %s997_s18, 0  ;;  %p43_p6 = scmp.eq.s32.totalorder %s41_s22, 0 }
   0xb   : > { %s1620_s21 = scalar_select %p1417_p3, 1, 0 }
   0xc   : > { %s1621_s23 = scalar_select %p1424_p5, 1, 0 }
   0xd   : > { %p998_p7 = scmp.ge.s32.totalorder %s1353_s17, 1  ;;  %p1431_p8 = por %p1424_p5, %p86_p4 }
   0xe   : > { %p151_p9 = scmp.lt.s32.totalorder %s1353_s17, 4  ;;  %s1355_s27 = smov [#allocation6]  }
   0xf   : > { %s1622_s24 = scalar_select %p1431_p8, 1, 0 }
  0x10   : > { %s1437_s25 = scalar_select %p43_p6, %s1341_s14, %s45_s20  }
  0x11   : > { %p1439_p10 = pnand %p998_p7, %p151_p9  ;;  %s167_s28 = sshll.u32 %s1355_s27, 4  ;;  %s168_s28 = int_to_ptr.vmem [resolvable:$true] %s167_s28 }
  0x12   : > { %s1243_s5 = scalar_lea.hbm %s1613_s2, 32 }
  0x13   : > { %s1623_s26 = scalar_select %p1439_p10, 1, 0 }
  0x14   : > { %p1104_p11 = pneg %p1439_p10  ;;  %p1244_p13 = scmp.ne.s32.totalorder %s1613_s2, %s1243_s5 }
  0x15   : > { %p1250_p4 = scmp.lt.u32.totalorder %s1243_s5, %s1613_s2 }
  0x16   : > { %p1447_p12 = pnand %p1104_p11, %p1424_p5 }
  0x18   : > { %p1245_p0 = pneg %p1447_p12 }
  0x1a   : > { %p1246_p1 = pnand %p1245_p0, %p1244_p13 }
  0x1c   : > { %p1247_p2 = pneg %p1246_p1 }
  0x1e   : > { %p1252_p6 = pnand %p1250_p4, %p1247_p2 }
  0x20   : > { %1255 = shalt.err (!%p1252_p6)
}
  0x21   : > { %s1256_s10 = scalar_lea.vmem %s168_s28, 32  ;;  %p1264_p5 = scmp.lt.s32.totalorder %s168_s28, %s168_s28 }
  0x22   : > { %p1257_p7 = scmp.ne.s32.totalorder %s168_s28, %s1256_s10  ;;  %p1265_p8 = scmp.lt.s32.totalorder %s1256_s10, %s1256_s10 }
  0x24   : > { %p1259_p9 = pnand %p1257_p7, %p1245_p0  ;;  %p1266_p10 = por %p1265_p8, %p1264_p5 }
  0x26   : > { %p1260_p11 = pneg %p1259_p9 }
  0x28   : > { %p1267_p3 = pnand %p1266_p10, %p1260_p11 }
  0x2a   : > { %1270 = shalt.err (!%p1267_p3)
}
  0x2b   : > { %1107 = dma.hbm_to_vmem [thread:$0]  (!%p1447_p12), %s1613_s2, 32, %s168_s28, [#allocation7]  }
  0x2c   : > { %p1000_p13 = scmp.ge.s32.totalorder %s1353_s17, 3 }
  0x2d   : > { %p1625_p1 = scmp.ne.s32.totalorder (!%p1000_p13), %s1620_s21, 0 }
  0x2e   : > { %174 = sbr.rel (%p1000_p13) target bundleno = 89 (0x59), region = 20 }
  0x35   : > { %177 = sbr.rel (!%p1625_p1) target bundleno = 62 (0x3e), region = 24  ;;  %s179_s18 = sand.u32 (%p1625_p1), 1, %s1341_s14  }
  0x36   : > { %s1078_s20 = smul.u32 (%p1625_p1), 12, %s1349_s16 }
  0x37   : > { %s1094_s22 = smul.u32 (%p1625_p1), 48, %s179_s18 }
  0x38   : > { %s187_s4 = scalar_lea.vmem (%p1625_p1), %s1611_s0, %s1078_s20 }
  0x39   : > { %v202_v0 = vld [vmem:[%s187_s4] sm:$0xff] (%p1625_p1)  ;;  %v206_v2 = vld [vmem:[%s187_s4 + $0x48] sm:$0xff] (%p1625_p1)  ;;  %s181_s29 = scalar_lea.vmem (%p1625_p1), [#allocation3], %s1094_s22  ;;  %v1006_v6 = vld [vmem:[%s187_s4 + $0x50] sm:$0xf] (%p1625_p1) }
  0x3a   : > { %v204_v1 = vld [vmem:[%s187_s4 + $0x24] sm:$0xff] (%p1625_p1)  ;;  %203 = vst [vmem:[%s181_s29] sm:$0xff] (%p1625_p1), %v202_v0  ;;  %207 = vst [vmem:[%s181_s29 + $0x18] sm:$0xff] (%p1625_p1), %v206_v2  ;;  %v208_v3 = vld [vmem:[%s187_s4 + $0x6c] sm:$0xff] (%p1625_p1) }
  0x3b   : > { %205 = vst [vmem:[%s181_s29 + $0xc] sm:$0xff] (%p1625_p1), %v204_v1  ;;  %v1002_v4 = vld [vmem:[%s187_s4 + $0x8] sm:$0xf] (%p1625_p1)  ;;  %v1004_v5 = vld [vmem:[%s187_s4 + $0x2c] sm:$0xf] (%p1625_p1)  ;;  %209 = vst [vmem:[%s181_s29 + $0x24] sm:$0xff] (%p1625_p1), %v208_v3 }
  0x3c   : > { %1003 = vst [vmem:[%s181_s29 + $0x8] sm:$0xf] %v1002_v4  ;;  %1005 = vst [vmem:[%s181_s29 + $0x14] sm:$0xf] %v1004_v5  ;;  %v1008_v7 = vld [vmem:[%s187_s4 + $0x74] sm:$0xf] }
  0x3d   : > { %1007 = vst [vmem:[%s181_s29 + $0x20] sm:$0xf] %v1006_v6  ;;  %1009 = vst [vmem:[%s181_s29 + $0x2c] sm:$0xf] %v1008_v7 }
  0x3e PF: > { %s231_s28 = sand.u32 1, %s1341_s14   ;;  %s1085_s5 = smul.u32 6144, %s1349_s16 }
  0x3f   : > { %s1095_s6 = smul.u32 384, %s231_s28  ;;  %s1484_s12 = scalar_lea.sflag [#allocation5], %s231_s28 }
  0x40   : > { %s1480_s9 = scalar_lea.hbm %s1612_s1, %s1085_s5  ;;  %p1626_p5 = scmp.ne.s32.totalorder %s1620_s21, 0 }
  0x41   : > { %s235_s10 = scalar_lea.vmem [#allocation4], %s1095_s6  ;;  %s1271_s18 = scalar_lea.hbm %s1480_s9, 6144 }
  0x42   : > { %s245_s11 = sshll.u32 %s235_s10, 4  ;;  %p1272_p3 = scmp.ne.s32.totalorder %s1480_s9, %s1271_s18  ;;  %s1482_s11 = int_to_ptr.vmem [resolvable:$true] %s245_s11 }
  0x43   : > { %s1275_s27 = scalar_lea.hbm %s1612_s1, 18432  ;;  %p1276_p12 = scmp.lt.u32.totalorder %s1480_s9, %s1612_s1 }
  0x44   : > { %p1273_p8 = pnand %p1272_p3, %p1626_p5  ;;  %p1277_p0 = scmp.lt.u32.totalorder %s1275_s27, %s1271_s18 }
  0x45   : > { %p1279_p4 = scmp.lt.u32.totalorder %s1271_s18, %s1480_s9 }
  0x46   : > { %p1274_p10 = pneg %p1273_p8  ;;  %p1278_p2 = por %p1277_p0, %p1276_p12 }
  0x48   : > { %p1280_p6 = por %p1279_p4, %p1278_p2 }
  0x4a   : > { %p1281_p7 = pnand %p1280_p6, %p1274_p10 }
  0x4c   : > { %1284 = shalt.err (!%p1281_p7)
}
  0x4d   : > { %s1285_s29 = scalar_lea.vmem %s1482_s11, 6144  ;;  %s1356_s28 = smov [#allocation4]  }
  0x4e   : > { %p1286_p9 = scmp.ne.s32.totalorder %s1482_s11, %s1285_s29  ;;  %s1289_s5 = sshll.u32 %s1356_s28, 4  ;;  %s1290_s5 = int_to_ptr.vmem [resolvable:$false] %s1289_s5 }
  0x4f   : > { %s1291_s6 = scalar_lea.vmem %s1290_s5, 12288  ;;  %p1292_p1 = scmp.lt.s32.totalorder %s1482_s11, %s1290_s5 }
  0x50   : > { %p1287_p11 = pnand %p1286_p9, %p1626_p5  ;;  %p1293_p3 = scmp.lt.s32.totalorder %s1291_s6, %s1285_s29 }
  0x52   : > { %p1288_p13 = pneg %p1287_p11  ;;  %p1294_p8 = por %p1293_p3, %p1292_p1 }
  0x54   : > { %p1295_p12 = pnand %p1294_p8, %p1288_p13 }
  0x56   : > { %1298 = shalt.err (!%p1295_p12)
}
  0x57   : > { %s1357_s7 = smov 128   ;;  %s1358_s8 = smov 8  }
  0x58   : > { %1100 = dma.hbm_to_vmem [thread:$0]  (%p1626_p5), %s1480_s9, 6144, %s1482_s11, %s1484_s12, %s1357_s7, %s1357_s7, %s1358_s8  }
  0x59 PF: > { %p1627_p10 = scmp.ne.s32.totalorder %s1623_s26, 0 }
  0x5a   : > { %s260_s10 = sand.u32 (!%p1627_p10), 1, %s1337_s13   ;;  %p1628_p0 = scmp.ne.s32.totalorder (!%p1627_p10), %s1622_s24, 0 }
  0x5b   : > { %257 = sbr.rel (%p1627_p10) target bundleno = 418 (0x1a2), region = 54  ;;  %s267_s27 = scalar_lea.sflag (!%p1627_p10), [#allocation5], %s260_s10 }
  0x5c   : > { %s1096_s18 = smul.u32 (!%p1627_p10), 48, %s260_s10 }
  0x5d   : > { %s1097_s20 = smul.u32 (!%p1627_p10), 384, %s260_s10 }
  0x5e   : > { %s1511_s22 = scalar_lea.vmem (!%p1627_p10), [#allocation3], %s1096_s18 }
  0x5f   : > { %s1513_s30 = scalar_lea.vmem (!%p1627_p10), [#allocation4], %s1097_s20 }
  0x62   : > { %1324 = dma.done.wait (%p1628_p0), %s267_s27, 6144  }
  0x63   : > { %1326 = vsyncadd (%p1628_p0), %s267_s27, 4294961152  ;;  %p1629_p5 = scmp.ne.s32.totalorder %s1621_s23, 0 }
  0x65   : > { %1328 = dma.done.wait (%p1629_p5), [#allocation7], 32  }
  0x66   : > { %1330 = vsyncadd (%p1629_p5), [#allocation7], 4294967264  ;;  %p1014_p2 = scmp.ne.s32.totalorder %s1345_s15, 0 }
  0x67   : > { %v1359_v8 = vmov (!%p1014_p2), 0.0  }
  0x68   : > { %327 = sbr.rel (%p1014_p2) target bundleno = 111 (0x6f), region = 70  ;;  %328 = vst [vmem:[#allocation2] sm:$0xff] (!%p1014_p2), %v1359_v8  ;;  %329 = vst [vmem:[#allocation2 + $0x8] sm:$0xff] (!%p1014_p2), %v1359_v8 }
  0x69   : > { %330 = vst [vmem:[#allocation2 + $0x10] sm:$0xff] (!%p1014_p2), %v1359_v8  ;;  %331 = vst [vmem:[#allocation2 + $0x18] sm:$0xff] (!%p1014_p2), %v1359_v8 }
  0x6a   : > { %332 = vst [vmem:[#allocation2 + $0x20] sm:$0xff] (!%p1014_p2), %v1359_v8  ;;  %333 = vst [vmem:[#allocation2 + $0x28] sm:$0xff] (!%p1014_p2), %v1359_v8 }
  0x6b   : > { %334 = vst [vmem:[#allocation2 + $0x30] sm:$0xff] (!%p1014_p2), %v1359_v8  ;;  %335 = vst [vmem:[#allocation2 + $0x38] sm:$0xff] (!%p1014_p2), %v1359_v8 }
  0x6f PF: > { %v1163_v9 = vld [vmem:[%s1513_s30 + $0x4] ss:$8 sps:$4 sm:$0xff]   ;;  %v1165_v10 = vld [vmem:[%s1513_s30] ss:$8 sps:$4 sm:$0xff]   ;;  %v1360_v11 = vmov 0   ;;  %p1069_p4 = scmp.ne.s32.totalorder %s1345_s15, 2 }
  0x70   : > { %757 = vmatprep.mubr.bf16.mxu0 %v1360_v11  ;;  %672 = vmatprep.subr.bf16.mxu1 %v1163_v9  ;;  %v1166_v12 = vld [vmem:[%s1513_s30 + $0x14] ss:$8 sps:$4 sm:$0xff]   ;;  %v1168_v13 = vld [vmem:[%s1513_s30 + $0x10] ss:$8 sps:$4 sm:$0xff]   ;;  %v1169_v14 = vld [vmem:[%s1513_s30 + $0x24] ss:$8 sps:$4 sm:$0xff]  }
  0x71   : > { %673 = vmatpush1.bf16.msra.mxu1 %v1165_v10  ;;  %v1171_v15 = vld [vmem:[%s1513_s30 + $0x20] ss:$8 sps:$4 sm:$0xff]   ;;  %v1172_v16 = vld [vmem:[%s1513_s30 + $0x34] ss:$8 sps:$4 sm:$0xff]   ;;  %v1174_v17 = vld [vmem:[%s1513_s30 + $0x30] ss:$8 sps:$4 sm:$0xff]  }
  0x72   : > { %674 = vmatprep.subr.bf16.mxu1 %v1166_v12  ;;  %v1187_v18 = vld [vmem:[%s1513_s30 + $0x104] ss:$8 sps:$4 sm:$0xff]   ;;  %v1189_v19 = vld [vmem:[%s1513_s30 + $0x100] ss:$8 sps:$4 sm:$0xff]   ;;  %v1193_v21 = vld [vmem:[%s1513_s30 + $0x114] ss:$8 sps:$4 sm:$0xff]  }
  0x73   : > { %v1175_v20 = vld [vmem:[%s1513_s30 + $0x44] ss:$8 sps:$4 sm:$0xff]   ;;  %725 = vmatprep.subr.bf16.mxu0 %v1187_v18  ;;  %v1195_v22 = vld [vmem:[%s1513_s30 + $0x110] ss:$8 sps:$4 sm:$0xff]   ;;  %v1177_v23 = vld [vmem:[%s1513_s30 + $0x40] ss:$8 sps:$4 sm:$0xff]  }
  0x74   : > { %726 = vmatpush1.bf16.msra.mxu0 %v1189_v19  ;;  %v1178_v24 = vld [vmem:[%s1513_s30 + $0x54] ss:$8 sps:$4 sm:$0xff]   ;;  %v1199_v25 = vld [vmem:[%s1513_s30 + $0x124] ss:$8 sps:$4 sm:$0xff]   ;;  %v1201_v26 = vld [vmem:[%s1513_s30 + $0x120] ss:$8 sps:$4 sm:$0xff]  }
  0x75   : > { %675 = vmatpush1.bf16.msra.mxu1 %v1168_v13  ;;  %727 = vmatprep.subr.bf16.mxu0 %v1193_v21  ;;  %v1180_v27 = vld [vmem:[%s1513_s30 + $0x50] ss:$8 sps:$4 sm:$0xff]   ;;  %v1205_v28 = vld [vmem:[%s1513_s30 + $0x134] ss:$8 sps:$4 sm:$0xff]   ;;  %v1181_v29 = vld [vmem:[%s1513_s30 + $0x64] ss:$8 sps:$4 sm:$0xff]  }
  0x76   : > { %676 = vmatprep.subr.bf16.mxu1 %v1169_v14  ;;  %v1207_v30 = vld [vmem:[%s1513_s30 + $0x130] ss:$8 sps:$4 sm:$0xff]   ;;  %v1183_v31 = vld [vmem:[%s1513_s30 + $0x60] ss:$8 sps:$4 sm:$0xff]   ;;  %v1211_v32 = vld [vmem:[%s1513_s30 + $0x144] ss:$8 sps:$4 sm:$0xff]  }
  0x77   : > { %v1184_v33 = vld [vmem:[%s1513_s30 + $0x74] ss:$8 sps:$4 sm:$0xff]   ;;  %v1213_v34 = vld [vmem:[%s1513_s30 + $0x140] ss:$8 sps:$4 sm:$0xff]   ;;  %v1186_v35 = vld [vmem:[%s1513_s30 + $0x70] ss:$8 sps:$4 sm:$0xff]  }
  0x78   : > { %728 = vmatpush1.bf16.msra.mxu0 %v1195_v22  ;;  %v1217_v36 = vld [vmem:[%s1513_s30 + $0x154] ss:$8 sps:$4 sm:$0xff]   ;;  %v1190_v37 = vld [vmem:[%s1513_s30 + $0x84] ss:$8 sps:$4 sm:$0xff]   ;;  %v1219_v38 = vld [vmem:[%s1513_s30 + $0x150] ss:$8 sps:$4 sm:$0xff]  }
  0x79   : > { %677 = vmatpush1.bf16.msra.mxu1 %v1171_v15  ;;  %729 = vmatprep.subr.bf16.mxu0 %v1199_v25  ;;  %v1192_v39 = vld [vmem:[%s1513_s30 + $0x80] ss:$8 sps:$4 sm:$0xff]   ;;  %v1223_v40 = vld [vmem:[%s1513_s30 + $0x164] ss:$8 sps:$4 sm:$0xff]   ;;  %v1196_v41 = vld [vmem:[%s1513_s30 + $0x94] ss:$8 sps:$4 sm:$0xff]  }
  0x7a   : > { %678 = vmatprep.subr.bf16.mxu1 %v1172_v16  ;;  %v1198_v42 = vld [vmem:[%s1513_s30 + $0x90] ss:$8 sps:$4 sm:$0xff]   ;;  %v1225_v43 = vld [vmem:[%s1513_s30 + $0x160] ss:$8 sps:$4 sm:$0xff]   ;;  %v1229_v45 = vld [vmem:[%s1513_s30 + $0x174] ss:$8 sps:$4 sm:$0xff]  }
  0x7b   : > { %v1238_v44 = vld [vmem:[%s1511_s22 + $0x4] ss:$12 sps:$4 sm:$0xff]   ;;  %v1235_v50 = vld [vmem:[%s1511_s22 + $0x8] ss:$12 sps:$4 sm:$0xff]   ;;  %v1239_v55 = vld [vmem:[%s1511_s22 + $0x20] ss:$12 sps:$4 sm:$0xff]  }
  0x7c   : > { %730 = vmatpush1.bf16.msra.mxu0 %v1201_v26  ;;  %v1202_v46 = vld [vmem:[%s1513_s30 + $0xa4] ss:$8 sps:$4 sm:$0xff]   ;;  %704 = vmatprep.mubr.bf16.mxu1 %v1238_v44  ;;  %v1231_v47 = vld [vmem:[%s1513_s30 + $0x170] ss:$8 sps:$4 sm:$0xff]   ;;  %v1204_v48 = vld [vmem:[%s1513_s30 + $0xa0] ss:$8 sps:$4 sm:$0xff]  }
  0x7d   : > { %679 = vmatpush1.bf16.msra.mxu1 %v1174_v17  ;;  %731 = vmatprep.subr.bf16.mxu0 %v1205_v28  ;;  %v1208_v49 = vld [vmem:[%s1513_s30 + $0xb4] ss:$8 sps:$4 sm:$0xff]   ;;  %v1210_v51 = vld [vmem:[%s1513_s30 + $0xb0] ss:$8 sps:$4 sm:$0xff]   ;;  %v1214_v52 = vld [vmem:[%s1513_s30 + $0xc4] ss:$8 sps:$4 sm:$0xff]  }
  0x7e   : > { %680 = vmatprep.subr.bf16.mxu1 %v1175_v20  ;;  %v1216_v53 = vld [vmem:[%s1513_s30 + $0xc0] ss:$8 sps:$4 sm:$0xff]   ;;  %v1220_v54 = vld [vmem:[%s1513_s30 + $0xd4] ss:$8 sps:$4 sm:$0xff]   ;;  %v1222_v56 = vld [vmem:[%s1513_s30 + $0xd0] ss:$8 sps:$4 sm:$0xff]  }
  0x7f   : > { %v1226_v57 = vld [vmem:[%s1513_s30 + $0xe4] ss:$8 sps:$4 sm:$0xff]   ;;  %v1228_v58 = vld [vmem:[%s1513_s30 + $0xe0] ss:$8 sps:$4 sm:$0xff]   ;;  %v1232_v59 = vld [vmem:[%s1513_s30 + $0xf4] ss:$8 sps:$4 sm:$0xff]  }
  0x80   : > { %732 = vmatpush1.bf16.msra.mxu0 %v1207_v30  ;;  %v1234_v60 = vld [vmem:[%s1513_s30 + $0xf0] ss:$8 sps:$4 sm:$0xff]   ;;  %v336_v8 = vld [vmem:[#allocation2] sm:$0xff] }
  0x81   : > { %681 = vmatpush1.bf16.msra.mxu1 %v1177_v23  ;;  %733 = vmatprep.subr.bf16.mxu0 %v1211_v32  ;;  %v1236_v61 = vld [vmem:[%s1511_s22] ss:$12 sps:$4 sm:$0xff]   ;;  %v1240_v62 = vld [vmem:[%s1511_s22 + $0x1c] ss:$12 sps:$4 sm:$0xff]   ;;  %v1242_v63 = vld [vmem:[%s1511_s22 + $0x18] ss:$12 sps:$4 sm:$0xff]  }
  0x82   : > { %682 = vmatprep.subr.bf16.mxu1 %v1178_v24  ;;  %v338_v14 = vld [vmem:[#allocation2 + $0x10] sm:$0xff]  ;;  %v339_v18 = vld [vmem:[#allocation2 + $0x18] sm:$0xff]  ;;  %v340_v24 = vld [vmem:[#allocation2 + $0x20] sm:$0xff] }
  0x83   : > { %v342_v30 = vld [vmem:[#allocation2 + $0x30] sm:$0xff] }
  0x84   : > { %734 = vmatpush1.bf16.msra.mxu0 %v1213_v34  ;;  %v343_v34 = vld [vmem:[#allocation2 + $0x38] sm:$0xff] }
  0x85   : > { %683 = vmatpush1.bf16.msra.mxu1 %v1180_v27  ;;  %735 = vmatprep.subr.bf16.mxu0 %v1217_v36  ;;  %v341_v27 = vld [vmem:[#allocation2 + $0x28] sm:$0xff] }
  0x86   : > { %684 = vmatprep.subr.bf16.mxu1 %v1181_v29 }
  0x88   : > { %736 = vmatpush1.bf16.msra.mxu0 %v1219_v38 }
  0x89   : > { %685 = vmatpush1.bf16.msra.mxu1 %v1183_v31  ;;  %737 = vmatprep.subr.bf16.mxu0 %v1223_v40  ;;  %v808_v40 = vlaneseq (!%p1069_p4) }
  0x8a   : > { %686 = vmatprep.subr.bf16.mxu1 %v1184_v33 }
  0x8c   : > { %738 = vmatpush1.bf16.msra.mxu0 %v1225_v43 }
  0x8d   : > { %687 = vmatpush1.bf16.msra.mxu1 %v1186_v35  ;;  %739 = vmatprep.subr.bf16.mxu0 %v1229_v45 }
  0x8e   : > { %688 = vmatprep.subr.bf16.mxu1 %v1190_v37 }
  0x90   : > { %740 = vmatpush1.bf16.msra.mxu0 %v1231_v47 }
  0x91   : > { %689 = vmatpush1.bf16.msra.mxu1 %v1192_v39 }
  0x92   : > { %690 = vmatprep.subr.bf16.mxu1 %v1196_v41  ;;  %v809_v41 = vshrl.u32 (!%p1069_p4), %v808_v40, 7 }
  0x93   : > { %758 = vmatmul.mubr.bf16.vlgmr.msra.gmra.mrb[0].mxu0 %v1235_v50 }
  0x94   : > { %767 = vmatprep.mubr.bf16.mxu0 %v1360_v11  ;;  %v337_v11 = vld [vmem:[#allocation2 + $0x8] sm:$0xff]  ;;  %v810_v45 = vsub.s32 (!%p1069_p4), 0, %v809_v41 }
  0x95   : > { %691 = vmatpush1.bf16.msra.mxu1 %v1198_v42  ;;  %v806_v42 = vld [vmem:[#allocation6] sm:$0x3] (!%p1069_p4) }
  0x96   : > { %692 = vmatprep.subr.bf16.mxu1 %v1202_v46  ;;  %v814_v46 = vsub.s32 (!%p1069_p4), 1, %v809_v41  ;;  %v811_v50 = vrot.slane (!%p1069_p4), %v806_v42, %v810_v45 }
  0x99   : > { %693 = vmatpush1.bf16.msra.mxu1 %v1204_v48 }
  0x9a   : > { %694 = vmatprep.subr.bf16.mxu1 %v1208_v49 }
  0x9b   : > { %768 = vmatmul.mubr.bf16.gmra.mrb[4].mxu0 %v1239_v55 }
  0x9d   : > { %695 = vmatpush1.bf16.msra.mxu1 %v1210_v51  ;;  %v815_v51 = vrot.slane (!%p1069_p4), %v806_v42, %v814_v46 }
  0x9e   : > { %696 = vmatprep.subr.bf16.mxu1 %v1214_v52 }
  0xa1   : > { %697 = vmatpush1.bf16.msra.mxu1 %v1216_v53 }
  0xa2   : > { %698 = vmatprep.subr.bf16.mxu1 %v1220_v54 }
  0xa5   : > { %699 = vmatpush1.bf16.msra.mxu1 %v1222_v56 }
  0xa6   : > { %700 = vmatprep.subr.bf16.mxu1 %v1226_v57 }
  0xa9   : > { %701 = vmatpush1.bf16.msra.mxu1 %v1228_v58 }
  0xaa   : > { %702 = vmatprep.subr.bf16.mxu1 %v1232_v59 }
  0xad   : > { %703 = vmatpush1.bf16.msra.mxu1 %v1234_v60 }
  0xb0   : > { %705 = vmatmul.mubr.bf16.vlgmr.msra.gmra.mrb[0].mxu1 %v1236_v61 }
  0xb1   : > { %714 = vmatprep.mubr.bf16.mxu1 %v1240_v62 }
  0xb8   : > { %715 = vmatmul.mubr.bf16.gmra.mrb[4].mxu1 %v1242_v63 }
 0x166   : > { %v759_v0 = vpop.f32.mrb[0].mxu0 }
 0x167   : > { %v761_v1 = vpop.f32.mrb[1].mxu0 }
 0x168   : > { %v763_v2 = vpop.f32.mrb[2].mxu0 }
 0x169   : > { %v765_v3 = vpop.f32.mrb[3].mxu0 }
 0x16e   : > { %v769_v4 = vpop.f32.mrb[4].mxu0 }
 0x16f   : > { %v771_v5 = vpop.f32.mrb[5].mxu0 }
 0x170   : > { %v773_v6 = vpop.f32.mrb[6].mxu0 }
 0x171   : > { %v775_v7 = vpop.f32.mrb[7].mxu0 }
 0x183   : > { %v706_v9 = vpop.f32.mrb[0].mxu1 }
 0x184   : > { %v760_v10 = vadd.f32 %v759_v0, %v706_v9  ;;  %v708_v12 = vpop.f32.mrb[1].mxu1 }
 0x185   : > { %v762_v13 = vadd.f32 %v761_v1, %v708_v12  ;;  %v710_v15 = vpop.f32.mrb[2].mxu1 }
 0x186   : > { %v778_v16 = vadd.f32 %v760_v10, %v336_v8  ;;  %v764_v17 = vadd.f32 %v763_v2, %v710_v15  ;;  %v712_v19 = vpop.f32.mrb[3].mxu1 }
 0x187   : > { %v779_v20 = vadd.f32 %v762_v13, %v337_v11  ;;  %v766_v21 = vadd.f32 %v765_v3, %v712_v19 }
 0x188   : > { %786 = vst [vmem:[#allocation2] sm:$0xff] %v778_v16  ;;  %v780_v22 = vadd.f32 %v764_v17, %v338_v14 }
 0x189   : > { %787 = vst [vmem:[#allocation2 + $0x8] sm:$0xff] %v779_v20  ;;  %v781_v23 = vadd.f32 %v766_v21, %v339_v18 }
 0x18a   : > { %788 = vst [vmem:[#allocation2 + $0x10] sm:$0xff] %v780_v22 }
 0x18b   : > { %789 = vst [vmem:[#allocation2 + $0x18] sm:$0xff] %v781_v23  ;;  %v716_v25 = vpop.f32.mrb[4].mxu1 }
 0x18c   : > { %v770_v26 = vadd.f32 %v769_v4, %v716_v25  ;;  %v718_v28 = vpop.f32.mrb[5].mxu1 }
 0x18d   : > { %v772_v29 = vadd.f32 %v771_v5, %v718_v28  ;;  %v720_v31 = vpop.f32.mrb[6].mxu1  ;;  %797 = sbr.rel (%p1069_p4) target bundleno = 418 (0x1a2), region = 74 }
 0x18e   : > { %v782_v32 = vadd.f32 %v770_v26, %v340_v24  ;;  %v774_v33 = vadd.f32 %v773_v6, %v720_v31  ;;  %v722_v35 = vpop.f32.mrb[7].mxu1 }
 0x18f   : > { %v783_v36 = vadd.f32 %v772_v29, %v341_v27  ;;  %v776_v37 = vadd.f32 %v775_v7, %v722_v35  ;;  %v798_v43 = vld [vmem:[#allocation2] sm:$0xff] (!%p1069_p4) }
 0x190   : > { %790 = vst [vmem:[#allocation2 + $0x20] sm:$0xff] %v782_v32  ;;  %v784_v38 = vadd.f32 %v774_v33, %v342_v30  ;;  %v799_v44 = vld [vmem:[#allocation2 + $0x8] sm:$0xff] (!%p1069_p4)  ;;  %v818_v55 = vadd.f32 (!%p1069_p4), %v811_v50, %v798_v43 }
 0x191   : > { %791 = vst [vmem:[#allocation2 + $0x28] sm:$0xff] %v783_v36  ;;  %v785_v39 = vadd.f32 %v776_v37, %v343_v34  ;;  %v800_v47 = vld [vmem:[#allocation2 + $0x10] sm:$0xff] (!%p1069_p4)  ;;  %v819_v56 = vadd.f32 (!%p1069_p4), %v815_v51, %v799_v44 }
 0x192   : > { %792 = vst [vmem:[#allocation2 + $0x30] sm:$0xff] %v784_v38  ;;  %v801_v48 = vld [vmem:[#allocation2 + $0x18] sm:$0xff] (!%p1069_p4)  ;;  %v820_v57 = vadd.f32 (!%p1069_p4), %v811_v50, %v800_v47  ;;  %v826_v63 = vmax.f32 (!%p1069_p4), %v818_v55, 0.0 }
 0x193   : > { %793 = vst [vmem:[#allocation2 + $0x38] sm:$0xff] %v785_v39  ;;  %v821_v58 = vadd.f32 (!%p1069_p4), %v815_v51, %v801_v48  ;;  %v827_v0 = vmax.f32 (!%p1069_p4), %v819_v56, 0.0 }
 0x194   : > { %v828_v1 = vmax.f32 %v820_v57, 0.0 }
 0x195   : > { %v829_v2 = vmax.f32 %v821_v58, 0.0  ;;  %v1081_v7 = vpack.c.bf16 %v827_v0, %v826_v63 }
 0x197   : > { %v802_v49 = vld [vmem:[#allocation2 + $0x20] sm:$0xff]  ;;  %v1082_v8 = vpack.c.bf16 %v829_v2, %v828_v1  ;;  %858 = vst [vmem:[%s1614_s3] sm:$0xff] %v1081_v7 }
 0x198   : > { %v803_v52 = vld [vmem:[#allocation2 + $0x28] sm:$0xff]  ;;  %v822_v59 = vadd.f32 %v811_v50, %v802_v49 }
 0x199   : > { %v804_v53 = vld [vmem:[#allocation2 + $0x30] sm:$0xff]  ;;  %v823_v60 = vadd.f32 %v815_v51, %v803_v52  ;;  %859 = vst [vmem:[%s1614_s3 + $0x8] sm:$0xff] %v1082_v8 }
 0x19a   : > { %v805_v54 = vld [vmem:[#allocation2 + $0x38] sm:$0xff]  ;;  %v824_v61 = vadd.f32 %v811_v50, %v804_v53  ;;  %v830_v3 = vmax.f32 %v822_v59, 0.0 }
 0x19b   : > { %v825_v62 = vadd.f32 %v815_v51, %v805_v54  ;;  %v831_v4 = vmax.f32 %v823_v60, 0.0 }
 0x19c   : > { %v832_v5 = vmax.f32 %v824_v61, 0.0 }
 0x19d   : > { %v833_v6 = vmax.f32 %v825_v62, 0.0  ;;  %v1083_v9 = vpack.c.bf16 %v831_v4, %v830_v3 }
 0x19f   : > { %v1084_v10 = vpack.c.bf16 %v833_v6, %v832_v5  ;;  %860 = vst [vmem:[%s1614_s3 + $0x10] sm:$0xff] %v1083_v9 }
 0x1a1   : > { %861 = vst [vmem:[%s1614_s3 + $0x18] sm:$0xff] %v1084_v10 }
 0x1a2 PF: > { %s17_s17 = sadd.s32 1, %s1353_s17   ;;  %s1630_s12 = smov %s1337_s13 }
 0x1a3   : > { %p14_p6 = scmp.ge.s32.totalorder %s17_s17, 5   ;;  %s1631_s13 = smov %s1341_s14 }
 0x1a4   : > { %s1632_s14 = smov %s1437_s25  ;;  %s1633_s15 = smov %s1349_s16 }
 0x1a5   : > { %s1634_s16 = smov %s1636_s19  ;;  %16 = sbr.rel (!%p14_p6) target bundleno = 5 (0x5), region = 125 }
 0x1ac   :  { %895 = vsyncpa [#allocation5], 1 }
 0x1ad   :  { %897 = vsyncpa [#allocation5 + $0x1], 1 }
 0x1ae   :  { %898 = vsyncpa [#allocation7], 1 }

// kernel: discriminator_forward.9
= control target key start
LH: loop header
LB: loop body
LE: loop exit
PB: predicated region body
PF: predicated region fallthrough
CT: control target
= control target key end

     0   :  { %s1194_s1 = inlined_call_operand.vmem [shape: bf16[1024,128], index: 1, kind: input, shape index: {}]   ;;  %s1195_s0 = inlined_call_operand.vmem [shape: bf16[8,1024], index: 0, kind: input, shape index: {}]   ;;  %s1196_s2 = inlined_call_operand.vmem [shape: f32[1,128], index: 2, kind: input, shape index: {}]   ;;  %s1197_s3 = inlined_call_operand.vmem [shape: f32[8,128], index: 3, kind: output, shape index: {}]  }
   0x1   :  { %v892_v0 = vld [vmem:[%s1194_s1 + $0x40] sm:$0xff]   ;;  %v896_v4 = vld [vmem:[%s1194_s1 + $0x48] sm:$0xff]   ;;  %v900_v8 = vld [vmem:[%s1194_s1 + $0x50] sm:$0xff]  }
   0x2   :  { %v893_v1 = vld [vmem:[%s1194_s1 + $0xc0] sm:$0xff]   ;;  %804 = vmatprep.subr.bf16.mxu0 %v892_v0  ;;  %v897_v5 = vld [vmem:[%s1194_s1 + $0xc8] sm:$0xff]   ;;  %v901_v9 = vld [vmem:[%s1194_s1 + $0xd0] sm:$0xff]  }
   0x3   :  { %v894_v2 = vld [vmem:[%s1194_s1] sm:$0xff]   ;;  %826 = vmatprep.subr.bf16.mxu1 %v893_v1  ;;  %v898_v6 = vld [vmem:[%s1194_s1 + $0x8] sm:$0xff]   ;;  %v902_v10 = vld [vmem:[%s1194_s1 + $0x10] sm:$0xff]  }
   0x4   :  { %v895_v3 = vld [vmem:[%s1194_s1 + $0x80] sm:$0xff]   ;;  %805 = vmatpush3.bf16.msra.mxu0 %v894_v2  ;;  %v899_v7 = vld [vmem:[%s1194_s1 + $0x88] sm:$0xff]   ;;  %v903_v11 = vld [vmem:[%s1194_s1 + $0x90] sm:$0xff]  }
   0x5   :  { %827 = vmatpush3.bf16.msra.mxu1 %v895_v3  ;;  %806 = vmatprep.subr.bf16.mxu0 %v896_v4  ;;  %v904_v12 = vld [vmem:[%s1194_s1 + $0x58] sm:$0xff]   ;;  %v908_v16 = vld [vmem:[%s1194_s1 + $0x60] sm:$0xff]   ;;  %v912_v20 = vld [vmem:[%s1194_s1 + $0x68] sm:$0xff]  }
   0x6   :  { %828 = vmatprep.subr.bf16.mxu1 %v897_v5  ;;  %v905_v13 = vld [vmem:[%s1194_s1 + $0xd8] sm:$0xff]   ;;  %v909_v17 = vld [vmem:[%s1194_s1 + $0xe0] sm:$0xff]   ;;  %v913_v21 = vld [vmem:[%s1194_s1 + $0xe8] sm:$0xff]  }
   0x7   :  { %v906_v14 = vld [vmem:[%s1194_s1 + $0x18] sm:$0xff]   ;;  %v910_v18 = vld [vmem:[%s1194_s1 + $0x20] sm:$0xff]   ;;  %v914_v22 = vld [vmem:[%s1194_s1 + $0x28] sm:$0xff]  }
   0x8   :  { %807 = vmatpush3.bf16.msra.mxu0 %v898_v6  ;;  %v907_v15 = vld [vmem:[%s1194_s1 + $0x98] sm:$0xff]   ;;  %v911_v19 = vld [vmem:[%s1194_s1 + $0xa0] sm:$0xff]   ;;  %v915_v23 = vld [vmem:[%s1194_s1 + $0xa8] sm:$0xff]  }
   0x9   :  { %829 = vmatpush3.bf16.msra.mxu1 %v899_v7  ;;  %808 = vmatprep.subr.bf16.mxu0 %v900_v8  ;;  %v916_v24 = vld [vmem:[%s1194_s1 + $0x70] sm:$0xff]   ;;  %v920_v28 = vld [vmem:[%s1194_s1 + $0x78] sm:$0xff]   ;;  %v15_v32 = vld [vmem:[%s1195_s0] sm:$0xff] }
   0xa   :  { %830 = vmatprep.subr.bf16.mxu1 %v901_v9  ;;  %v917_v25 = vld [vmem:[%s1194_s1 + $0xf0] sm:$0xff]   ;;  %v921_v29 = vld [vmem:[%s1194_s1 + $0xf8] sm:$0xff]   ;;  %v16_v33 = vld [vmem:[%s1195_s0 + $0x8] sm:$0xff]  ;;  %v732_v34 = vcombine.low %v15_v32, %v15_v32  ;;  %v733_v35 = vcombine.high %v15_v32, %v15_v32 }
   0xb   :  { %v918_v26 = vld [vmem:[%s1194_s1 + $0x30] sm:$0xff]   ;;  %v922_v30 = vld [vmem:[%s1194_s1 + $0x38] sm:$0xff]   ;;  %v734_v36 = vcombine.low %v16_v33, %v16_v33  ;;  %v735_v37 = vcombine.high %v16_v33, %v16_v33  ;;  %v928_v38 = vld [vmem:[%s1194_s1 + $0x140] sm:$0xff]  }
   0xc   :  { %809 = vmatpush3.bf16.msra.mxu0 %v902_v10  ;;  %v919_v27 = vld [vmem:[%s1194_s1 + $0xb0] sm:$0xff]   ;;  %v923_v31 = vld [vmem:[%s1194_s1 + $0xb8] sm:$0xff]   ;;  %v929_v39 = vld [vmem:[%s1194_s1 + $0x1c0] sm:$0xff]   ;;  %598 = vmatprep.mubr.bf16.mxu0 %v733_v35 }
   0xd   :  { %831 = vmatpush3.bf16.msra.mxu1 %v903_v11  ;;  %810 = vmatprep.subr.bf16.mxu0 %v904_v12  ;;  %v930_v40 = vld [vmem:[%s1194_s1 + $0x100] sm:$0xff]   ;;  %v932_v42 = vld [vmem:[%s1194_s1 + $0x148] sm:$0xff]   ;;  %v936_v46 = vld [vmem:[%s1194_s1 + $0x150] sm:$0xff]  }
   0xe   :  { %832 = vmatprep.subr.bf16.mxu1 %v905_v13  ;;  %638 = vmatprep.mubr.bf16.mxu1 %v735_v37  ;;  %v931_v41 = vld [vmem:[%s1194_s1 + $0x180] sm:$0xff]   ;;  %v933_v43 = vld [vmem:[%s1194_s1 + $0x1c8] sm:$0xff]   ;;  %v937_v47 = vld [vmem:[%s1194_s1 + $0x1d0] sm:$0xff]  }
   0xf   :  { %v934_v44 = vld [vmem:[%s1194_s1 + $0x108] sm:$0xff]   ;;  %v938_v48 = vld [vmem:[%s1194_s1 + $0x110] sm:$0xff]   ;;  %v940_v50 = vld [vmem:[%s1194_s1 + $0x158] sm:$0xff]  }
  0x10   :  { %811 = vmatpush3.bf16.msra.mxu0 %v906_v14  ;;  %v935_v45 = vld [vmem:[%s1194_s1 + $0x188] sm:$0xff]   ;;  %v939_v49 = vld [vmem:[%s1194_s1 + $0x190] sm:$0xff]   ;;  %v941_v51 = vld [vmem:[%s1194_s1 + $0x1d8] sm:$0xff]  }
  0x11   :  { %833 = vmatpush3.bf16.msra.mxu1 %v907_v15  ;;  %812 = vmatprep.subr.bf16.mxu0 %v908_v16  ;;  %v942_v52 = vld [vmem:[%s1194_s1 + $0x118] sm:$0xff]   ;;  %v944_v54 = vld [vmem:[%s1194_s1 + $0x160] sm:$0xff]   ;;  %v948_v58 = vld [vmem:[%s1194_s1 + $0x168] sm:$0xff]  }
  0x12   :  { %834 = vmatprep.subr.bf16.mxu1 %v909_v17  ;;  %v943_v53 = vld [vmem:[%s1194_s1 + $0x198] sm:$0xff]   ;;  %v945_v55 = vld [vmem:[%s1194_s1 + $0x1e0] sm:$0xff]   ;;  %v949_v59 = vld [vmem:[%s1194_s1 + $0x1e8] sm:$0xff]  }
  0x13   :  { %v946_v56 = vld [vmem:[%s1194_s1 + $0x120] sm:$0xff]   ;;  %v950_v60 = vld [vmem:[%s1194_s1 + $0x128] sm:$0xff]   ;;  %v952_v62 = vld [vmem:[%s1194_s1 + $0x170] sm:$0xff]  }
  0x14   :  { %813 = vmatpush3.bf16.msra.mxu0 %v910_v18  ;;  %v947_v57 = vld [vmem:[%s1194_s1 + $0x1a0] sm:$0xff]   ;;  %v951_v61 = vld [vmem:[%s1194_s1 + $0x1a8] sm:$0xff]   ;;  %v953_v63 = vld [vmem:[%s1194_s1 + $0x1f0] sm:$0xff]  }
  0x15   :  { %835 = vmatpush3.bf16.msra.mxu1 %v911_v19  ;;  %814 = vmatprep.subr.bf16.mxu0 %v912_v20  ;;  %v954_v0 = vld [vmem:[%s1194_s1 + $0x130] sm:$0xff]   ;;  %v956_v2 = vld [vmem:[%s1194_s1 + $0x178] sm:$0xff]   ;;  %v731_v14 = vld [vmem:[%s1196_s2] ss:$0 sm:$0xff] }
  0x16   :  { %836 = vmatprep.subr.bf16.mxu1 %v913_v21  ;;  %v955_v1 = vld [vmem:[%s1194_s1 + $0x1b0] sm:$0xff]   ;;  %v957_v3 = vld [vmem:[%s1194_s1 + $0x1f8] sm:$0xff]  }
  0x17   :  { %v958_v4 = vld [vmem:[%s1194_s1 + $0x138] sm:$0xff]   ;;  %v17_v6 = vld [vmem:[%s1195_s0 + $0x10] sm:$0xff] }
  0x18   :  { %815 = vmatpush3.bf16.msra.mxu0 %v914_v22  ;;  %v959_v5 = vld [vmem:[%s1194_s1 + $0x1b8] sm:$0xff]   ;;  %v736_v7 = vcombine.low %v17_v6, %v17_v6  ;;  %v737_v8 = vcombine.high %v17_v6, %v17_v6 }
  0x19   :  { %837 = vmatpush3.bf16.msra.mxu1 %v915_v23  ;;  %816 = vmatprep.subr.bf16.mxu0 %v916_v24  ;;  %v18_v9 = vld [vmem:[%s1195_s0 + $0x18] sm:$0xff] }
  0x1a   :  { %838 = vmatprep.subr.bf16.mxu1 %v917_v25  ;;  %v738_v10 = vcombine.low %v18_v9, %v18_v9  ;;  %v739_v11 = vcombine.high %v18_v9, %v18_v9 }
  0x1c   :  { %817 = vmatpush3.bf16.msra.mxu0 %v918_v26 }
  0x1d   :  { %839 = vmatpush3.bf16.msra.mxu1 %v919_v27  ;;  %818 = vmatprep.subr.bf16.mxu0 %v920_v28 }
  0x1e   :  { %840 = vmatprep.subr.bf16.mxu1 %v921_v29 }
  0x20   :  { %819 = vmatpush3.bf16.msra.mxu0 %v922_v30 }
  0x21   :  { %841 = vmatpush3.bf16.msra.mxu1 %v923_v31  ;;  %848 = vmatprep.subr.bf16.mxu0 %v928_v38 }
  0x22   :  { %870 = vmatprep.subr.bf16.mxu1 %v929_v39 }
  0x23   :  { %599 = vmatmul.mubr.bf16.vlgmr.msra.gmra.mrb[0].mxu0 %v732_v34 }
  0x24   :  { %639 = vmatmul.mubr.bf16.vlgmr.msra.gmra.mrb[0].mxu1 %v734_v36  ;;  %849 = vmatpush3.bf16.msra.mxu0 %v930_v40 }
  0x25   :  { %871 = vmatpush3.bf16.msra.mxu1 %v931_v41  ;;  %850 = vmatprep.subr.bf16.mxu0 %v932_v42 }
  0x26   :  { %872 = vmatprep.subr.bf16.mxu1 %v933_v43  ;;  %678 = vmatprep.mubr.bf16.mxu0 %v737_v8 }
  0x27   :  { %718 = vmatprep.mubr.bf16.mxu1 %v739_v11 }
  0x28   :  { %851 = vmatpush3.bf16.msra.mxu0 %v934_v44 }
  0x29   :  { %873 = vmatpush3.bf16.msra.mxu1 %v935_v45  ;;  %852 = vmatprep.subr.bf16.mxu0 %v936_v46 }
  0x2a   :  { %874 = vmatprep.subr.bf16.mxu1 %v937_v47 }
  0x2c   :  { %853 = vmatpush3.bf16.msra.mxu0 %v938_v48 }
  0x2d   :  { %875 = vmatpush3.bf16.msra.mxu1 %v939_v49  ;;  %854 = vmatprep.subr.bf16.mxu0 %v940_v50 }
  0x2e   :  { %876 = vmatprep.subr.bf16.mxu1 %v941_v51 }
  0x30   :  { %855 = vmatpush3.bf16.msra.mxu0 %v942_v52 }
  0x31   :  { %877 = vmatpush3.bf16.msra.mxu1 %v943_v53  ;;  %856 = vmatprep.subr.bf16.mxu0 %v944_v54 }
  0x32   :  { %878 = vmatprep.subr.bf16.mxu1 %v945_v55 }
  0x34   :  { %857 = vmatpush3.bf16.msra.mxu0 %v946_v56 }
  0x35   :  { %879 = vmatpush3.bf16.msra.mxu1 %v947_v57  ;;  %858 = vmatprep.subr.bf16.mxu0 %v948_v58 }
  0x36   :  { %880 = vmatprep.subr.bf16.mxu1 %v949_v59 }
  0x38   :  { %859 = vmatpush3.bf16.msra.mxu0 %v950_v60 }
  0x39   :  { %881 = vmatpush3.bf16.msra.mxu1 %v951_v61  ;;  %860 = vmatprep.subr.bf16.mxu0 %v952_v62 }
  0x3a   :  { %882 = vmatprep.subr.bf16.mxu1 %v953_v63 }
  0x3c   :  { %861 = vmatpush3.bf16.msra.mxu0 %v954_v0 }
  0x3d   :  { %883 = vmatpush3.bf16.msra.mxu1 %v955_v1  ;;  %862 = vmatprep.subr.bf16.mxu0 %v956_v2 }
  0x3e   :  { %884 = vmatprep.subr.bf16.mxu1 %v957_v3 }
  0x40   :  { %863 = vmatpush3.bf16.msra.mxu0 %v958_v4 }
  0x41   :  { %885 = vmatpush3.bf16.msra.mxu1 %v959_v5 }
  0x43   :  { %679 = vmatmul.mubr.bf16.vlgmr.msra.gmra.mrb[4].mxu0 %v736_v7 }
  0x44   :  { %719 = vmatmul.mubr.bf16.vlgmr.msra.gmra.mrb[4].mxu1 %v738_v10 }
  0xf6   :  { %v820_v12 = vpop.f32.mrb[0].mxu0 }
  0xf7   :  { %v842_v13 = vpop.f32.mrb[0].mxu1  ;;  %v821_v15 = vpop.f32.mrb[1].mxu0 }
  0xf8   :  { %v843_v16 = vpop.f32.mrb[1].mxu1  ;;  %v822_v17 = vadd.f32 %v821_v15, %v820_v12  ;;  %v823_v19 = vpop.f32.mrb[2].mxu0 }
  0xf9   :  { %v844_v18 = vadd.f32 %v843_v16, %v842_v13  ;;  %v845_v20 = vpop.f32.mrb[2].mxu1  ;;  %v824_v21 = vpop.f32.mrb[3].mxu0 }
  0xfa   :  { %v846_v22 = vpop.f32.mrb[3].mxu1  ;;  %v601_v23 = vadd.f32 %v822_v17, %v731_v14 }
  0xfc   :  { %v641_v24 = vadd.f32 %v844_v18, %v601_v23 }
 0x116   :  { %v864_v25 = vpop.f32.mrb[4].mxu0 }
 0x117   :  { %v886_v26 = vpop.f32.mrb[4].mxu1  ;;  %v865_v27 = vpop.f32.mrb[5].mxu0 }
 0x118   :  { %v887_v28 = vpop.f32.mrb[5].mxu1  ;;  %v866_v29 = vadd.f32 %v865_v27, %v864_v25  ;;  %v867_v31 = vpop.f32.mrb[6].mxu0 }
 0x119   :  { %v888_v30 = vadd.f32 %v887_v28, %v886_v26  ;;  %v889_v32 = vpop.f32.mrb[6].mxu1  ;;  %v868_v33 = vpop.f32.mrb[7].mxu0 }
 0x11a   :  { %v890_v34 = vpop.f32.mrb[7].mxu1  ;;  %v681_v35 = vadd.f32 %v866_v29, %v641_v24 }
 0x11c   :  { %v721_v36 = vadd.f32 %v888_v30, %v681_v35 }
 0x11e   :  { %726 = vst [vmem:[%s1197_s3] sm:$0xff] %v721_v36 }

// kernel: discriminator_forward.7
= control target key start
LH: loop header
LB: loop body
LE: loop exit
PB: predicated region body
PF: predicated region fallthrough
CT: control target
= control target key end

     0   :  { %s2162_s0 = inlined_call_operand.vmem [shape: bf16[8,2304], index: 0, kind: input, shape index: {}]   ;;  %s2163_s1 = inlined_call_operand.hbm [shape: bf16[2304,512], index: 1, kind: input, shape index: {}]   ;;  %s2164_s2 = inlined_call_operand.hbm [shape: f32[1,512], index: 2, kind: input, shape index: {}]   ;;  %s2165_s3 = inlined_call_operand.vmem [shape: bf16[8,512], index: 3, kind: output, shape index: {}]  }
   0x1   :  { %2171 = sst [smem:[#allocation10_spill]] %s2163_s1 }
   0x2   :  { %8 = vsyncpa [#allocation4], 0 }
   0x3   :  { %10 = vsyncpa [#allocation4 + $0x1], 0 }
   0x4   :  { %11 = vsyncpa [#allocation6], 0 }
   0x5   :  { %13 = vsyncpa [#allocation6 + $0x1], 0  ;;  %s1774_s12 = smov 0   ;;  %s1776_s13 = smov 0  }
   0x6   :  { %s1778_s14 = smov 0   ;;  %s1780_s15 = smov 0  }
   0x7   :  { %s1782_s16 = smov 0   ;;  %s1784_s17 = smov 0  }
   0x8   :  { %s1786_s18 = smov 0   ;;  %s1788_s19 = smov 0  }
   0x9   :  { %s1790_s20 = smov 0   ;;  %s1792_s21 = smov 0  }
   0xa   :  { %s1794_s22 = smov 0  }
   0xb LB: > { %s31_s23 = sadd.s32 1, %s1738_s20  ;;  %p82_p1 = scmp.ne.s32.totalorder %s1726_s17, %s1722_s16  ;;  %s1746_s22 = sphi %s1794_s22, %s19_s22   ;;  %s1742_s21 = sphi %s1792_s21, %s2199_s21   ;;  %s1738_s20 = sphi %s1790_s20, %s2198_s20   ;;  %s1734_s19 = sphi %s1788_s19, %s2197_s19   ;;  %s1730_s18 = sphi %s1786_s18, %s2196_s18   ;;  %s1726_s17 = sphi %s1784_s17, %s2195_s17   ;;  %s1722_s16 = sphi %s1782_s16, %s2194_s16   ;;  %s1718_s15 = sphi %s1780_s15, %s2193_s15   ;;  %s1714_s14 = sphi %s1778_s14, %s2192_s14   ;;  %s1710_s13 = sphi %s1776_s13, %s2191_s13   ;;  %s1706_s12 = sphi %s1774_s12, %s2190_s12  }
   0xc   : > { %p1831_p0 = scmp.ge.s32.totalorder %s31_s23, 3  ;;  %p2167_p2 = scmp.eq.s32.totalorder %s1746_s22, 0 }
   0xd   : > { %p2166_p4 = scmp.lt.s32.totalorder %s1746_s22, 6  ;;  %s179_s27 = sand.u32 1, %s1726_s17  }
   0xe   : > { %s2201_s23 = smov (%p1831_p0, %s31_s23), 0  ;;  %p84_p3 = por %p2167_p2, %p82_p1 }
   0xf   : > { %s1336_s28 = smul.u32 768, %s179_s27  ;;  %s1215_s29 = sshll.u32 %s1742_s21, 1 }
  0x10   : > { %s1333_s30 = smul.u32 384, %s1738_s20  ;;  %p1852_p5 = pnand %p2166_p4, %p84_p3 }
  0x11   : > { %s183_s6 = scalar_lea.vmem [#allocation3], %s1336_s28  ;;  %s2174_s1 = sld [smem:[#allocation10_spill]] }
  0x12   : > { %s190_s5 = sadd.s32 %s1333_s30, %s1215_s29  ;;  %s193_s7 = sshll.u32 %s183_s6, 4  ;;  %s1856_s7 = int_to_ptr.vmem [resolvable:$true] %s193_s7 }
  0x13   : > { %s1217_s8 = sshll.u32 %s190_s5, 6  ;;  %s1864_s24 = scalar_lea.sflag [#allocation4], %s179_s27 }
  0x14   : > { %p1594_p8 = pneg %p1852_p5 }
  0x17   : > { %s1861_s11 = scalar_lea.hbm %s2174_s1, %s1217_s8  ;;  %s1597_s30 = scalar_lea.hbm %s2174_s1, 73728 }
  0x18   : > { %s1592_s26 = scalar_lea.hbm %s1861_s11, 12288  ;;  %p1598_p11 = scmp.lt.u32.totalorder %s1861_s11, %s2174_s1 }
  0x19   : > { %p1593_p7 = scmp.ne.s32.totalorder %s1861_s11, %s1592_s26  ;;  %p1599_p12 = scmp.lt.u32.totalorder %s1597_s30, %s1592_s26 }
  0x1a   : > { %p1601_p1 = scmp.lt.u32.totalorder %s1592_s26, %s1861_s11 }
  0x1b   : > { %p1595_p9 = pnand %p1594_p8, %p1593_p7  ;;  %p1600_p13 = por %p1599_p12, %p1598_p11 }
  0x1d   : > { %p1596_p10 = pneg %p1595_p9  ;;  %p1602_p3 = por %p1601_p1, %p1600_p13 }
  0x1f   : > { %p1603_p4 = pnand %p1602_p3, %p1596_p10 }
  0x21   : > { %1606 = shalt.err (!%p1603_p4)
}
  0x22   : > { %s1607_s27 = scalar_lea.vmem %s1856_s7, 12288  ;;  %s1748_s8 = smov [#allocation3]  }
  0x23   : > { %p1608_p7 = scmp.ne.s32.totalorder %s1856_s7, %s1607_s27  ;;  %s1612_s9 = sshll.u32 %s1748_s8, 4  ;;  %s1613_s9 = int_to_ptr.vmem [resolvable:$false] %s1612_s9 }
  0x24   : > { %s1614_s10 = scalar_lea.vmem %s1613_s9, 24576  ;;  %p1615_p6 = scmp.lt.s32.totalorder %s1856_s7, %s1613_s9 }
  0x25   : > { %p1610_p9 = pnand %p1608_p7, %p1594_p8  ;;  %p1616_p11 = scmp.lt.s32.totalorder %s1614_s10, %s1607_s27 }
  0x27   : > { %p1611_p2 = pneg %p1610_p9  ;;  %p1617_p12 = por %p1616_p11, %p1615_p6 }
  0x29   : > { %p1618_p13 = pnand %p1617_p12, %p1611_p2 }
  0x2b   : > { %1621 = shalt.err (!%p1618_p13)
}
  0x2c   : > { %s1749_s26 = smov 256   ;;  %s1750_s28 = smov 128  }
  0x2d   : > { %s1751_s29 = smov 8   ;;  %p220_p2 = scmp.lt.s32.totalorder %s1746_s22, 7 }
  0x2e   : > { %1345 = dma.hbm_to_vmem [thread:$0]  (!%p1852_p5), %s1861_s11, 12288, %s1856_s7, %s1864_s24, %s1749_s26, %s1750_s28, %s1751_s29  }
  0x2f   : > { %p2175_p4 = scmp.ge.s32.totalorder %s1746_s22, 1  ;;  %s1211_s5 = sadd.s32 4294967295, %s1746_s22  }
  0x30   : > { %s34_s6 = sadd.s32 1, %s1742_s21  ;;  %p88_p8 = scmp.ne.s32.totalorder %s1722_s16, %s1718_s15 }
  0x31   : > { %p1895_p6 = pnand %p2175_p4, %p220_p2  ;;  %s2203_s6 = smov (!%p1831_p0, %s34_s6), %s1742_s21 }
  0x32   : > { %p1906_p10 = scmp.eq.s32.totalorder %s1211_s5, 0  ;;  %p36_p5 = scmp.ge.s32.totalorder %s2203_s6, 2 }
  0x33   : > { %s101_s24 = sadd.s32 1, %s1714_s14  ;;  %p108_p3 = scmp.ne.s32.totalorder %s1714_s14, %s1710_s13 }
  0x34   : > { %p1913_p1 = por %p1906_p10, %p88_p8  ;;  %s2205_s6 = smov (%p36_p5, %s2203_s6), 0 }
  0x35   : > { %2179 = sst [smem:[#allocation9_spill]] %s2205_s6  ;;  %p2180_p0 = scmp.eq.s32.totalorder %s1746_s22, 0 }
  0x36   : > { %s2178_s7 = scalar_select %p1913_p1, 1, 0 }
  0x37   : > { %p1923_p7 = por %p108_p3, %p2180_p0  ;;  %p114_p9 = scmp.ne.s32.totalorder %s1710_s13, %s1706_s12 }
  0x38   : > { %s71_s25 = ssub.s32 %s1742_s21, %s2205_s6  ;;  %s203_s11 = sand.u32 1, %s1714_s14  }
  0x39   : > { %s2182_s27 = ssub.s32 %s1738_s20, %s2201_s23  ;;  %p99_p11 = scmp.eq.s32.totalorder %s71_s25, 0 }
  0x3a   : > { %s72_s8 = sor.u32 %s71_s25, %s2182_s27  ;;  %p1937_p13 = por %p114_p9, %p1906_p10 }
  0x3b   : > { %p73_p12 = scmp.eq.s32.totalorder %s72_s8, 0  ;;  %s2184_s26 = sadd.s32 1, %s1726_s17 }
  0x3c   : > { %s2183_s9 = scalar_select %p1937_p13, 1, 0 }
  0x3d   : > { %s1942_s10 = scalar_select %p99_p11, %s1714_s14, %s101_s24  }
  0x3e   : > { %s1947_s28 = scalar_select %p73_p12, %s1726_s17, %s2184_s26  }
  0x3f   : > { %s1218_s29 = sshll.u32 %s203_s11, 1  ;;  %s1334_s5 = sshll.u32 %s1742_s21, 5 }
  0x40   : > { %s1953_s6 = scalar_lea.hbm %s2164_s2, %s1334_s5  ;;  %s207_s4 = scalar_lea.vmem [#allocation5], %s1218_s29 }
  0x41   : > { %s215_s25 = sshll.u32 %s207_s4, 4  ;;  %p2185_p2 = scmp.lt.s32.totalorder %s1746_s22, 6  ;;  %s1955_s25 = int_to_ptr.vmem [resolvable:$true] %s215_s25 }
  0x42   : > { %s204_s27 = scalar_lea.sflag [#allocation6], %s203_s11  ;;  %s1622_s1 = scalar_lea.hbm %s1953_s6, 32 }
  0x43   : > { %p1961_p4 = pnand %p2185_p2, %p1923_p7  ;;  %p1623_p8 = scmp.ne.s32.totalorder %s1953_s6, %s1622_s1 }
  0x44   : > { %s1627_s15 = scalar_lea.hbm %s2164_s2, 64  ;;  %p1628_p0 = scmp.lt.u32.totalorder %s1953_s6, %s2164_s2 }
  0x45   : > { %p1624_p10 = pneg %p1961_p4  ;;  %p1629_p7 = scmp.lt.u32.totalorder %s1627_s15, %s1622_s1 }
  0x46   : > { %p1631_p11 = scmp.lt.u32.totalorder %s1622_s1, %s1953_s6 }
  0x47   : > { %p1625_p5 = pnand %p1624_p10, %p1623_p8  ;;  %p1630_p9 = por %p1629_p7, %p1628_p0 }
  0x49   : > { %p1626_p3 = pneg %p1625_p5  ;;  %p1632_p12 = por %p1631_p11, %p1630_p9 }
  0x4b   : > { %p1633_p2 = pnand %p1632_p12, %p1626_p3 }
  0x4d   : > { %1636 = shalt.err (!%p1633_p2)
}
  0x4e   : > { %s1637_s11 = scalar_lea.vmem %s1955_s25, 32  ;;  %s1752_s12 = smov [#allocation5]  }
  0x4f   : > { %p1638_p8 = scmp.ne.s32.totalorder %s1955_s25, %s1637_s11  ;;  %s1642_s4 = sshll.u32 %s1752_s12, 4  ;;  %s1643_s4 = int_to_ptr.vmem [resolvable:$false] %s1642_s4 }
  0x50   : > { %s1644_s8 = scalar_lea.vmem %s1643_s4, 64  ;;  %p1645_p1 = scmp.lt.s32.totalorder %s1955_s25, %s1643_s4 }
  0x51   : > { %p1640_p5 = pnand %p1638_p8, %p1624_p10  ;;  %p1646_p0 = scmp.lt.s32.totalorder %s1644_s8, %s1637_s11 }
  0x53   : > { %p1641_p13 = pneg %p1640_p5  ;;  %p1647_p7 = por %p1646_p0, %p1645_p1 }
  0x55   : > { %p1648_p9 = pnand %p1647_p7, %p1641_p13 }
  0x57   : > { %1651 = shalt.err (!%p1648_p9)
}
  0x58   : > { %1348 = dma.hbm_to_vmem [thread:$0]  (!%p1961_p4), %s1953_s6, 32, %s1955_s25, %s204_s27  }
  0x59   : > { %224 = sbr.rel (%p1895_p6) target bundleno = 472 (0x1d8), region = 32  ;;  %s226_s1 = sand.u32 (!%p1895_p6), 1, %s1722_s16  }
  0x5a   : > { %s1337_s26 = smul.u32 (!%p1895_p6), 768, %s226_s1  ;;  %s227_s15 = scalar_lea.sflag (!%p1895_p6), [#allocation4], %s226_s1 }
  0x5b   : > { %p2187_p10 = scmp.ne.s32.totalorder (!%p1895_p6), %s2178_s7, 0 }
  0x5c   : > { %s1993_s29 = scalar_lea.vmem (!%p1895_p6), [#allocation3], %s1337_s26 }
  0x60   : > { %1697 = dma.done.wait (%p2187_p10), %s227_s15, 12288  }
  0x61   : > { %1699 = vsyncadd (%p2187_p10), %s227_s15, 4294955008  ;;  %s235_s24 = sand.u32 1, %s1710_s13   ;;  %p2188_p6 = scmp.ne.s32.totalorder %s2183_s9, 0 }
  0x62   : > { %s2000_s5 = sshll.u32 %s235_s24, 1  ;;  %s236_s30 = scalar_lea.sflag [#allocation6], %s235_s24 }
  0x63   : > { %s239_s6 = scalar_lea.vmem [#allocation5], %s2000_s5 }
  0x64   : > { %1701 = dma.done.wait (%p2188_p6), %s236_s30, 32  }
  0x65   : > { %1703 = vsyncadd (%p2188_p6), %s236_s30, 4294967264  ;;  %s280_s25 = smul.u32 6, %s1730_s18  ;;  %s1224_s27 = sshll.u32 %s1734_s19, 1 }
  0x66   : > { %p296_p1 = scmp.lt.s32.totalorder %s1224_s27, 3  ;;  %p1226_p4 = scmp.ne.s32.totalorder %s1730_s18, 0 }
  0x67   : > { %p283_p13 = scmp.lt.s32.totalorder %s280_s25, 17  ;;  %v1753_v0 = vmov (!%p1226_p4), 0.0  }
  0x68   : > { %s2207_s27 = smov (!%p296_p1, %s1224_s27), 3  ;;  %306 = sbr.rel (%p1226_p4) target bundleno = 111 (0x6f), region = 44 }
  0x69   : > { %s2209_s25 = smov (!%p283_p13, %s280_s25), 17  ;;  %s1225_s7 = sshll.u32 %s2207_s27, 2  ;;  %307 = vst [vmem:[#allocation2] sm:$0xff] (!%p1226_p4), %v1753_v0  ;;  %308 = vst [vmem:[#allocation2 + $0x8] sm:$0xff] (!%p1226_p4), %v1753_v0 }
  0x6a   : > { %s1223_s11 = sshll.u32 %s2209_s25, 2  ;;  %s2012_s8 = scalar_lea.vmem %s2165_s3, %s1225_s7 }
  0x6b   : > { %s2017_s9 = scalar_lea.vmem %s2162_s0, %s1223_s11 }
  0x6f PF: > { %v1442_v1 = vld [vmem:[%s1993_s29 + $0x4] ss:$8 sps:$4 sm:$0xff]   ;;  %v1446_v3 = vld [vmem:[%s1993_s29] ss:$8 sps:$4 sm:$0xff]   ;;  %v1448_v5 = vld [vmem:[%s1993_s29 + $0x14] ss:$8 sps:$4 sm:$0xff]  }
  0x70   : > { %v1444_v2 = vld [vmem:[%s1993_s29 + $0x104] ss:$8 sps:$4 sm:$0xff]   ;;  %911 = vmatprep.subr.bf16.mxu0 %v1442_v1  ;;  %v1447_v4 = vld [vmem:[%s1993_s29 + $0x100] ss:$8 sps:$4 sm:$0xff]   ;;  %v1450_v6 = vld [vmem:[%s1993_s29 + $0x114] ss:$8 sps:$4 sm:$0xff]  }
  0x71   : > { %952 = vmatprep.subr.bf16.mxu1 %v1444_v2  ;;  %912 = vmatpush1.bf16.msra.mxu0 %v1446_v3  ;;  %v1452_v7 = vld [vmem:[%s1993_s29 + $0x10] ss:$8 sps:$4 sm:$0xff]   ;;  %v1454_v9 = vld [vmem:[%s1993_s29 + $0x24] ss:$8 sps:$4 sm:$0xff]   ;;  %v1458_v11 = vld [vmem:[%s1993_s29 + $0x20] ss:$8 sps:$4 sm:$0xff]  }
  0x72   : > { %953 = vmatpush1.bf16.msra.mxu1 %v1447_v4  ;;  %913 = vmatprep.subr.bf16.mxu0 %v1448_v5  ;;  %v1453_v8 = vld [vmem:[%s1993_s29 + $0x110] ss:$8 sps:$4 sm:$0xff]   ;;  %v1456_v10 = vld [vmem:[%s1993_s29 + $0x124] ss:$8 sps:$4 sm:$0xff]   ;;  %v1459_v12 = vld [vmem:[%s1993_s29 + $0x120] ss:$8 sps:$4 sm:$0xff]  }
  0x73   : > { %954 = vmatprep.subr.bf16.mxu1 %v1450_v6  ;;  %v1460_v13 = vld [vmem:[%s1993_s29 + $0x34] ss:$8 sps:$4 sm:$0xff]   ;;  %v1464_v15 = vld [vmem:[%s1993_s29 + $0x30] ss:$8 sps:$4 sm:$0xff]   ;;  %v1466_v17 = vld [vmem:[%s1993_s29 + $0x44] ss:$8 sps:$4 sm:$0xff]  }
  0x74   : > { %v1462_v14 = vld [vmem:[%s1993_s29 + $0x134] ss:$8 sps:$4 sm:$0xff]   ;;  %v1465_v16 = vld [vmem:[%s1993_s29 + $0x130] ss:$8 sps:$4 sm:$0xff]   ;;  %v1468_v18 = vld [vmem:[%s1993_s29 + $0x144] ss:$8 sps:$4 sm:$0xff]  }
  0x75   : > { %914 = vmatpush1.bf16.msra.mxu0 %v1452_v7  ;;  %v1470_v19 = vld [vmem:[%s1993_s29 + $0x40] ss:$8 sps:$4 sm:$0xff]   ;;  %v1472_v21 = vld [vmem:[%s1993_s29 + $0x54] ss:$8 sps:$4 sm:$0xff]   ;;  %v1476_v23 = vld [vmem:[%s1993_s29 + $0x50] ss:$8 sps:$4 sm:$0xff]  }
  0x76   : > { %955 = vmatpush1.bf16.msra.mxu1 %v1453_v8  ;;  %915 = vmatprep.subr.bf16.mxu0 %v1454_v9  ;;  %v1471_v20 = vld [vmem:[%s1993_s29 + $0x140] ss:$8 sps:$4 sm:$0xff]   ;;  %v1474_v22 = vld [vmem:[%s1993_s29 + $0x154] ss:$8 sps:$4 sm:$0xff]   ;;  %v1477_v24 = vld [vmem:[%s1993_s29 + $0x150] ss:$8 sps:$4 sm:$0xff]  }
  0x77   : > { %956 = vmatprep.subr.bf16.mxu1 %v1456_v10  ;;  %v1478_v25 = vld [vmem:[%s1993_s29 + $0x64] ss:$8 sps:$4 sm:$0xff]   ;;  %v1482_v27 = vld [vmem:[%s1993_s29 + $0x60] ss:$8 sps:$4 sm:$0xff]   ;;  %v1484_v29 = vld [vmem:[%s1993_s29 + $0x74] ss:$8 sps:$4 sm:$0xff]  }
  0x78   : > { %v1480_v26 = vld [vmem:[%s1993_s29 + $0x164] ss:$8 sps:$4 sm:$0xff]   ;;  %v1483_v28 = vld [vmem:[%s1993_s29 + $0x160] ss:$8 sps:$4 sm:$0xff]   ;;  %v1486_v30 = vld [vmem:[%s1993_s29 + $0x174] ss:$8 sps:$4 sm:$0xff]  }
  0x79   : > { %916 = vmatpush1.bf16.msra.mxu0 %v1458_v11  ;;  %v1488_v31 = vld [vmem:[%s1993_s29 + $0x70] ss:$8 sps:$4 sm:$0xff]   ;;  %v1490_v33 = vld [vmem:[%s1993_s29 + $0x84] ss:$8 sps:$4 sm:$0xff]   ;;  %v1494_v35 = vld [vmem:[%s1993_s29 + $0x80] ss:$8 sps:$4 sm:$0xff]  }
  0x7a   : > { %957 = vmatpush1.bf16.msra.mxu1 %v1459_v12  ;;  %917 = vmatprep.subr.bf16.mxu0 %v1460_v13  ;;  %v1489_v32 = vld [vmem:[%s1993_s29 + $0x170] ss:$8 sps:$4 sm:$0xff]   ;;  %v1492_v34 = vld [vmem:[%s1993_s29 + $0x184] ss:$8 sps:$4 sm:$0xff]   ;;  %v1495_v36 = vld [vmem:[%s1993_s29 + $0x180] ss:$8 sps:$4 sm:$0xff]  }
  0x7b   : > { %958 = vmatprep.subr.bf16.mxu1 %v1462_v14  ;;  %v1496_v37 = vld [vmem:[%s1993_s29 + $0x94] ss:$8 sps:$4 sm:$0xff]   ;;  %v1500_v39 = vld [vmem:[%s1993_s29 + $0x90] ss:$8 sps:$4 sm:$0xff]   ;;  %v1502_v41 = vld [vmem:[%s1993_s29 + $0xa4] ss:$8 sps:$4 sm:$0xff]  }
  0x7c   : > { %v1498_v38 = vld [vmem:[%s1993_s29 + $0x194] ss:$8 sps:$4 sm:$0xff]   ;;  %v1501_v40 = vld [vmem:[%s1993_s29 + $0x190] ss:$8 sps:$4 sm:$0xff]   ;;  %v1504_v42 = vld [vmem:[%s1993_s29 + $0x1a4] ss:$8 sps:$4 sm:$0xff]  }
  0x7d   : > { %918 = vmatpush1.bf16.msra.mxu0 %v1464_v15  ;;  %v1506_v43 = vld [vmem:[%s1993_s29 + $0xa0] ss:$8 sps:$4 sm:$0xff]   ;;  %v1508_v45 = vld [vmem:[%s1993_s29 + $0xb4] ss:$8 sps:$4 sm:$0xff]   ;;  %v1512_v50 = vld [vmem:[%s1993_s29 + $0xb0] ss:$8 sps:$4 sm:$0xff]  }
  0x7e   : > { %959 = vmatpush1.bf16.msra.mxu1 %v1465_v16  ;;  %919 = vmatprep.subr.bf16.mxu0 %v1466_v17  ;;  %v1507_v44 = vld [vmem:[%s1993_s29 + $0x1a0] ss:$8 sps:$4 sm:$0xff]   ;;  %v1510_v46 = vld [vmem:[%s1993_s29 + $0x1b4] ss:$8 sps:$4 sm:$0xff]   ;;  %v1513_v51 = vld [vmem:[%s1993_s29 + $0x1b0] ss:$8 sps:$4 sm:$0xff]  }
  0x7f   : > { %960 = vmatprep.subr.bf16.mxu1 %v1468_v18  ;;  %v311_v47 = vld [vmem:[%s2017_s9] sm:$0xff]  ;;  %v312_v49 = vld [vmem:[%s2017_s9 + $0x8] sm:$0xff]  ;;  %v1514_v53 = vld [vmem:[%s1993_s29 + $0xc4] ss:$8 sps:$4 sm:$0xff]   ;;  %p1329_p3 = scmp.ne.s32.totalorder %s1730_s18, 2 }
  0x80   : > { %v1228_v48 = vcombine.high %v311_v47, %v311_v47  ;;  %v1230_v52 = vcombine.high %v312_v49, %v312_v49  ;;  %v1516_v54 = vld [vmem:[%s1993_s29 + $0x1c4] ss:$8 sps:$4 sm:$0xff]   ;;  %v1518_v55 = vld [vmem:[%s1993_s29 + $0xc0] ss:$8 sps:$4 sm:$0xff]   ;;  %v1520_v57 = vld [vmem:[%s1993_s29 + $0xd4] ss:$8 sps:$4 sm:$0xff]   ;;  %v1227_v6 = vcombine.low %v311_v47, %v311_v47  ;;  %v1229_v7 = vcombine.low %v312_v49, %v312_v49 }
  0x81   : > { %920 = vmatpush1.bf16.msra.mxu0 %v1470_v19  ;;  %v1519_v56 = vld [vmem:[%s1993_s29 + $0x1c0] ss:$8 sps:$4 sm:$0xff]   ;;  %v1522_v58 = vld [vmem:[%s1993_s29 + $0x1d4] ss:$8 sps:$4 sm:$0xff]   ;;  %v1524_v59 = vld [vmem:[%s1993_s29 + $0xd0] ss:$8 sps:$4 sm:$0xff]  }
  0x82   : > { %961 = vmatpush1.bf16.msra.mxu1 %v1471_v20  ;;  %921 = vmatprep.subr.bf16.mxu0 %v1472_v21  ;;  %v1525_v60 = vld [vmem:[%s1993_s29 + $0x1d0] ss:$8 sps:$4 sm:$0xff]   ;;  %v1526_v61 = vld [vmem:[%s1993_s29 + $0xe4] ss:$8 sps:$4 sm:$0xff]   ;;  %v1530_v63 = vld [vmem:[%s1993_s29 + $0xe0] ss:$8 sps:$4 sm:$0xff]  }
  0x83   : > { %962 = vmatprep.subr.bf16.mxu1 %v1474_v22  ;;  %943 = vmatprep.mubr.bf16.mxu0 %v1228_v48  ;;  %v1528_v62 = vld [vmem:[%s1993_s29 + $0x1e4] ss:$8 sps:$4 sm:$0xff]   ;;  %v1531_v0 = vld [vmem:[%s1993_s29 + $0x1e0] ss:$8 sps:$4 sm:$0xff]   ;;  %v1532_v1 = vld [vmem:[%s1993_s29 + $0xf4] ss:$8 sps:$4 sm:$0xff]  }
  0x84   : > { %984 = vmatprep.mubr.bf16.mxu1 %v1230_v52  ;;  %v1534_v2 = vld [vmem:[%s1993_s29 + $0x1f4] ss:$8 sps:$4 sm:$0xff]   ;;  %v1536_v3 = vld [vmem:[%s1993_s29 + $0xf0] ss:$8 sps:$4 sm:$0xff]   ;;  %v1544_v5 = vld [vmem:[%s1993_s29 + $0x204] ss:$8 sps:$4 sm:$0xff]  }
  0x85   : > { %922 = vmatpush1.bf16.msra.mxu0 %v1476_v23  ;;  %v1537_v4 = vld [vmem:[%s1993_s29 + $0x1f0] ss:$8 sps:$4 sm:$0xff]   ;;  %v1542_v8 = vld [vmem:[%s1993_s29 + $0x200] ss:$8 sps:$4 sm:$0xff]   ;;  %v1547_v10 = vld [vmem:[%s1993_s29 + $0x214] ss:$8 sps:$4 sm:$0xff]  }
  0x86   : > { %963 = vmatpush1.bf16.msra.mxu1 %v1477_v24  ;;  %923 = vmatprep.subr.bf16.mxu0 %v1478_v25  ;;  %v2089_v9 = vld [vmem:[%s2017_s9 + $0x10] sm:$0xff]  ;;  %v1545_v12 = vld [vmem:[%s1993_s29 + $0x210] ss:$8 sps:$4 sm:$0xff]   ;;  %v1553_v15 = vld [vmem:[%s1993_s29 + $0x234] ss:$8 sps:$4 sm:$0xff]  }
  0x87   : > { %964 = vmatprep.subr.bf16.mxu1 %v1480_v26  ;;  %v1232_v11 = vcombine.high %v2089_v9, %v2089_v9  ;;  %v1550_v13 = vld [vmem:[%s1993_s29 + $0x224] ss:$8 sps:$4 sm:$0xff]   ;;  %v1548_v14 = vld [vmem:[%s1993_s29 + $0x220] ss:$8 sps:$4 sm:$0xff]   ;;  %v1551_v16 = vld [vmem:[%s1993_s29 + $0x230] ss:$8 sps:$4 sm:$0xff]  }
  0x88   : > { %v1556_v17 = vld [vmem:[%s1993_s29 + $0x244] ss:$8 sps:$4 sm:$0xff]   ;;  %v1554_v18 = vld [vmem:[%s1993_s29 + $0x240] ss:$8 sps:$4 sm:$0xff]   ;;  %v1559_v19 = vld [vmem:[%s1993_s29 + $0x254] ss:$8 sps:$4 sm:$0xff]  }
  0x89   : > { %924 = vmatpush1.bf16.msra.mxu0 %v1482_v27  ;;  %v1557_v20 = vld [vmem:[%s1993_s29 + $0x250] ss:$8 sps:$4 sm:$0xff]   ;;  %v1562_v21 = vld [vmem:[%s1993_s29 + $0x264] ss:$8 sps:$4 sm:$0xff]   ;;  %v1560_v22 = vld [vmem:[%s1993_s29 + $0x260] ss:$8 sps:$4 sm:$0xff]  }
  0x8a   : > { %965 = vmatpush1.bf16.msra.mxu1 %v1483_v28  ;;  %925 = vmatprep.subr.bf16.mxu0 %v1484_v29  ;;  %v1565_v23 = vld [vmem:[%s1993_s29 + $0x274] ss:$8 sps:$4 sm:$0xff]   ;;  %v1563_v24 = vld [vmem:[%s1993_s29 + $0x270] ss:$8 sps:$4 sm:$0xff]   ;;  %v1568_v25 = vld [vmem:[%s1993_s29 + $0x284] ss:$8 sps:$4 sm:$0xff]  }
  0x8b   : > { %966 = vmatprep.subr.bf16.mxu1 %v1486_v30  ;;  %v1566_v26 = vld [vmem:[%s1993_s29 + $0x280] ss:$8 sps:$4 sm:$0xff]   ;;  %v1571_v27 = vld [vmem:[%s1993_s29 + $0x294] ss:$8 sps:$4 sm:$0xff]   ;;  %v1569_v28 = vld [vmem:[%s1993_s29 + $0x290] ss:$8 sps:$4 sm:$0xff]  }
  0x8c   : > { %v1574_v29 = vld [vmem:[%s1993_s29 + $0x2a4] ss:$8 sps:$4 sm:$0xff]   ;;  %v1572_v30 = vld [vmem:[%s1993_s29 + $0x2a0] ss:$8 sps:$4 sm:$0xff]   ;;  %v309_v52 = vld [vmem:[#allocation2] sm:$0xff] }
  0x8d   : > { %926 = vmatpush1.bf16.msra.mxu0 %v1488_v31  ;;  %v1577_v31 = vld [vmem:[%s1993_s29 + $0x2b4] ss:$8 sps:$4 sm:$0xff]  }
  0x8e   : > { %967 = vmatpush1.bf16.msra.mxu1 %v1489_v32  ;;  %927 = vmatprep.subr.bf16.mxu0 %v1490_v33  ;;  %v1575_v32 = vld [vmem:[%s1993_s29 + $0x2b0] ss:$8 sps:$4 sm:$0xff]   ;;  %v1580_v33 = vld [vmem:[%s1993_s29 + $0x2c4] ss:$8 sps:$4 sm:$0xff]  }
  0x8f   : > { %968 = vmatprep.subr.bf16.mxu1 %v1492_v34  ;;  %v1578_v34 = vld [vmem:[%s1993_s29 + $0x2c0] ss:$8 sps:$4 sm:$0xff]  }
  0x91   : > { %928 = vmatpush1.bf16.msra.mxu0 %v1494_v35  ;;  %v1583_v35 = vld [vmem:[%s1993_s29 + $0x2d4] ss:$8 sps:$4 sm:$0xff]  }
  0x92   : > { %969 = vmatpush1.bf16.msra.mxu1 %v1495_v36  ;;  %929 = vmatprep.subr.bf16.mxu0 %v1496_v37  ;;  %v1581_v36 = vld [vmem:[%s1993_s29 + $0x2d0] ss:$8 sps:$4 sm:$0xff]   ;;  %v1586_v37 = vld [vmem:[%s1993_s29 + $0x2e4] ss:$8 sps:$4 sm:$0xff]  }
  0x93   : > { %970 = vmatprep.subr.bf16.mxu1 %v1498_v38  ;;  %v1584_v38 = vld [vmem:[%s1993_s29 + $0x2e0] ss:$8 sps:$4 sm:$0xff]  }
  0x95   : > { %930 = vmatpush1.bf16.msra.mxu0 %v1500_v39  ;;  %v1589_v39 = vld [vmem:[%s1993_s29 + $0x2f4] ss:$8 sps:$4 sm:$0xff]  }
  0x96   : > { %971 = vmatpush1.bf16.msra.mxu1 %v1501_v40  ;;  %931 = vmatprep.subr.bf16.mxu0 %v1502_v41  ;;  %v1587_v40 = vld [vmem:[%s1993_s29 + $0x2f0] ss:$8 sps:$4 sm:$0xff]   ;;  %v1231_v41 = vcombine.low %v2089_v9, %v2089_v9 }
  0x97   : > { %972 = vmatprep.subr.bf16.mxu1 %v1504_v42 }
  0x99   : > { %932 = vmatpush1.bf16.msra.mxu0 %v1506_v43 }
  0x9a   : > { %973 = vmatpush1.bf16.msra.mxu1 %v1507_v44  ;;  %933 = vmatprep.subr.bf16.mxu0 %v1508_v45 }
  0x9b   : > { %974 = vmatprep.subr.bf16.mxu1 %v1510_v46 }
  0x9d   : > { %934 = vmatpush1.bf16.msra.mxu0 %v1512_v50 }
  0x9e   : > { %975 = vmatpush1.bf16.msra.mxu1 %v1513_v51  ;;  %935 = vmatprep.subr.bf16.mxu0 %v1514_v53 }
  0x9f   : > { %976 = vmatprep.subr.bf16.mxu1 %v1516_v54 }
  0xa1   : > { %936 = vmatpush1.bf16.msra.mxu0 %v1518_v55  ;;  %v310_v55 = vld [vmem:[#allocation2 + $0x8] sm:$0xff] }
  0xa2   : > { %977 = vmatpush1.bf16.msra.mxu1 %v1519_v56  ;;  %937 = vmatprep.subr.bf16.mxu0 %v1520_v57 }
  0xa3   : > { %978 = vmatprep.subr.bf16.mxu1 %v1522_v58 }
  0xa5   : > { %938 = vmatpush1.bf16.msra.mxu0 %v1524_v59 }
  0xa6   : > { %979 = vmatpush1.bf16.msra.mxu1 %v1525_v60  ;;  %939 = vmatprep.subr.bf16.mxu0 %v1526_v61 }
  0xa7   : > { %980 = vmatprep.subr.bf16.mxu1 %v1528_v62  ;;  %v1046_v62 = vlaneseq (!%p1329_p3) }
  0xa9   : > { %940 = vmatpush1.bf16.msra.mxu0 %v1530_v63  ;;  %v1047_v63 = vshrl.u32 (!%p1329_p3), %v1046_v62, 7 }
  0xaa   : > { %981 = vmatpush1.bf16.msra.mxu1 %v1531_v0  ;;  %941 = vmatprep.subr.bf16.mxu0 %v1532_v1  ;;  %v1044_v0 = vld [vmem:[%s239_s6] sm:$0x3] (!%p1329_p3) }
  0xab   : > { %982 = vmatprep.subr.bf16.mxu1 %v1534_v2  ;;  %v1048_v1 = vsub.s32 (!%p1329_p3), 0, %v1047_v63  ;;  %v1052_v2 = vsub.s32 (!%p1329_p3), 1, %v1047_v63 }
  0xad   : > { %942 = vmatpush1.bf16.msra.mxu0 %v1536_v3 }
  0xae   : > { %983 = vmatpush1.bf16.msra.mxu1 %v1537_v4  ;;  %993 = vmatprep.subr.bf16.mxu0 %v1544_v5  ;;  %v1049_v5 = vrot.slane (!%p1329_p3), %v1044_v0, %v1048_v1 }
  0xb0   : > { %944 = vmatmul.mubr.bf16.vlgmr.msra.gmra.mrb[0].mxu0 %v1227_v6  ;;  %v1053_v6 = vrot.slane (!%p1329_p3), %v1044_v0, %v1052_v2 }
  0xb1   : > { %985 = vmatmul.mubr.bf16.vlgmr.msra.gmra.mrb[0].mxu1 %v1229_v7  ;;  %994 = vmatpush1.bf16.msra.mxu0 %v1542_v8 }
  0xb2   : > { %1025 = vmatprep.mubr.bf16.mxu0 %v1232_v11  ;;  %995 = vmatprep.subr.bf16.mxu0 %v1547_v10 }
  0xb5   : > { %996 = vmatpush1.bf16.msra.mxu0 %v1545_v12 }
  0xb6   : > { %997 = vmatprep.subr.bf16.mxu0 %v1550_v13 }
  0xb9   : > { %998 = vmatpush1.bf16.msra.mxu0 %v1548_v14 }
  0xba   : > { %999 = vmatprep.subr.bf16.mxu0 %v1553_v15 }
  0xbd   : > { %1000 = vmatpush1.bf16.msra.mxu0 %v1551_v16 }
  0xbe   : > { %1001 = vmatprep.subr.bf16.mxu0 %v1556_v17 }
  0xc1   : > { %1002 = vmatpush1.bf16.msra.mxu0 %v1554_v18 }
  0xc2   : > { %1003 = vmatprep.subr.bf16.mxu0 %v1559_v19 }
  0xc5   : > { %1004 = vmatpush1.bf16.msra.mxu0 %v1557_v20 }
  0xc6   : > { %1005 = vmatprep.subr.bf16.mxu0 %v1562_v21 }
  0xc9   : > { %1006 = vmatpush1.bf16.msra.mxu0 %v1560_v22 }
  0xca   : > { %1007 = vmatprep.subr.bf16.mxu0 %v1565_v23 }
  0xcd   : > { %1008 = vmatpush1.bf16.msra.mxu0 %v1563_v24 }
  0xce   : > { %1009 = vmatprep.subr.bf16.mxu0 %v1568_v25 }
  0xd1   : > { %1010 = vmatpush1.bf16.msra.mxu0 %v1566_v26 }
  0xd2   : > { %1011 = vmatprep.subr.bf16.mxu0 %v1571_v27 }
  0xd5   : > { %1012 = vmatpush1.bf16.msra.mxu0 %v1569_v28 }
  0xd6   : > { %1013 = vmatprep.subr.bf16.mxu0 %v1574_v29 }
  0xd9   : > { %1014 = vmatpush1.bf16.msra.mxu0 %v1572_v30 }
  0xda   : > { %1015 = vmatprep.subr.bf16.mxu0 %v1577_v31 }
  0xdd   : > { %1016 = vmatpush1.bf16.msra.mxu0 %v1575_v32 }
  0xde   : > { %1017 = vmatprep.subr.bf16.mxu0 %v1580_v33 }
  0xe1   : > { %1018 = vmatpush1.bf16.msra.mxu0 %v1578_v34 }
  0xe2   : > { %1019 = vmatprep.subr.bf16.mxu0 %v1583_v35 }
  0xe5   : > { %1020 = vmatpush1.bf16.msra.mxu0 %v1581_v36 }
  0xe6   : > { %1021 = vmatprep.subr.bf16.mxu0 %v1586_v37 }
  0xe9   : > { %1022 = vmatpush1.bf16.msra.mxu0 %v1584_v38 }
  0xea   : > { %1023 = vmatprep.subr.bf16.mxu0 %v1589_v39 }
  0xed   : > { %1024 = vmatpush1.bf16.msra.mxu0 %v1587_v40 }
  0xf0   : > { %1026 = vmatmul.mubr.bf16.vlgmr.msra.gmra.mrb[4].mxu0 %v1231_v41 }
 0x183   : > { %v945_v42 = vpop.f32.mrb[0].mxu0 }
 0x184   : > { %v986_v43 = vpop.f32.mrb[0].mxu1  ;;  %v947_v45 = vpop.f32.mrb[1].mxu0 }
 0x185   : > { %v987_v44 = vadd.f32 %v986_v43, %v945_v42  ;;  %v988_v46 = vpop.f32.mrb[1].mxu1  ;;  %v949_v48 = vpop.f32.mrb[2].mxu0 }
 0x186   : > { %v989_v47 = vadd.f32 %v988_v46, %v947_v45  ;;  %v990_v49 = vpop.f32.mrb[2].mxu1  ;;  %v950_v50 = vpop.f32.mrb[3].mxu0 }
 0x187   : > { %v991_v51 = vpop.f32.mrb[3].mxu1 }
 0x1c3   : > { %v1027_v53 = vpop.f32.mrb[4].mxu0  ;;  %1041 = sbr.rel (%p1329_p3) target bundleno = 472 (0x1d8), region = 48 }
 0x1c4   : > { %v1028_v54 = vadd.f32 %v1027_v53, %v987_v44  ;;  %v1029_v56 = vpop.f32.mrb[5].mxu0 }
 0x1c5   : > { %v1030_v57 = vadd.f32 %v1029_v56, %v989_v47  ;;  %v1031_v58 = vpop.f32.mrb[6].mxu0 }
 0x1c6   : > { %v1034_v59 = vadd.f32 %v1028_v54, %v309_v52  ;;  %v1032_v60 = vpop.f32.mrb[7].mxu0 }
 0x1c7   : > { %v1035_v61 = vadd.f32 %v1030_v57, %v310_v55 }
 0x1c8   : > { %1036 = vst [vmem:[#allocation2] sm:$0xff] %v1034_v59 }
 0x1c9   : > { %1037 = vst [vmem:[#allocation2 + $0x8] sm:$0xff] %v1035_v61 }
 0x1cf   : > { %v1042_v3 = vld [vmem:[#allocation2] sm:$0xff] }
 0x1d0   : > { %v1043_v4 = vld [vmem:[#allocation2 + $0x8] sm:$0xff]  ;;  %v1056_v7 = vadd.f32 %v1049_v5, %v1042_v3 }
 0x1d1   : > { %v1057_v8 = vadd.f32 %v1053_v6, %v1043_v4 }
 0x1d2   : > { %v1058_v9 = vmax.f32 %v1056_v7, 0.0 }
 0x1d3   : > { %v1059_v10 = vmax.f32 %v1057_v8, 0.0 }
 0x1d5   : > { %v1335_v11 = vpack.c.bf16 %v1059_v10, %v1058_v9 }
 0x1d7   : > { %1068 = vst [vmem:[%s2012_s8] sm:$0xff] %v1335_v11 }
 0x1d8 PF: > { %s19_s22 = sadd.s32 1, %s1746_s22   ;;  %s2189_s29 = sld [smem:[#allocation9_spill]] }
 0x1d9   : > { %p16_p11 = scmp.ge.s32.totalorder %s19_s22, 8   ;;  %s2190_s12 = smov %s1710_s13 }
 0x1da   : > { %s2191_s13 = smov %s1714_s14  ;;  %s2192_s14 = smov %s1942_s10 }
 0x1db   : > { %s2193_s15 = smov %s1722_s16  ;;  %s2194_s16 = smov %s1726_s17 }
 0x1dc   : > { %s2195_s17 = smov %s1947_s28  ;;  %s2196_s18 = smov %s1738_s20 }
 0x1dd   : > { %s2197_s19 = smov %s1742_s21  ;;  %s2198_s20 = smov %s2201_s23 }
 0x1de   : > { %s2199_s21 = smov %s2189_s29  ;;  %18 = sbr.rel (!%p16_p11) target bundleno = 11 (0xb), region = 96 }
 0x1e5   :  { %1099 = vsyncpa [#allocation4], 1 }
 0x1e6   :  { %1101 = vsyncpa [#allocation4 + $0x1], 1 }
 0x1e7   :  { %1102 = vsyncpa [#allocation6], 1 }
 0x1e8   :  { %1104 = vsyncpa [#allocation6 + $0x1], 1 }

// kernel: discriminator_forward.8
= control target key start
LH: loop header
LB: loop body
LE: loop exit
PB: predicated region body
PF: predicated region fallthrough
CT: control target
= control target key end

     0   :  { %s2162_s0 = inlined_call_operand.vmem [shape: bf16[8,4608], index: 0, kind: input, shape index: {}]   ;;  %s2163_s1 = inlined_call_operand.hbm [shape: bf16[4608,1024], index: 1, kind: input, shape index: {}]   ;;  %s2164_s2 = inlined_call_operand.hbm [shape: f32[1,1024], index: 2, kind: input, shape index: {}]   ;;  %s2165_s3 = inlined_call_operand.vmem [shape: bf16[8,1024], index: 3, kind: output, shape index: {}]  }
   0x1   :  { %2171 = sst [smem:[#allocation10_spill]] %s2163_s1 }
   0x2   :  { %8 = vsyncpa [#allocation4], 0 }
   0x3   :  { %10 = vsyncpa [#allocation4 + $0x1], 0 }
   0x4   :  { %11 = vsyncpa [#allocation6], 0 }
   0x5   :  { %13 = vsyncpa [#allocation6 + $0x1], 0  ;;  %s1774_s12 = smov 0   ;;  %s1776_s13 = smov 0  }
   0x6   :  { %s1778_s14 = smov 0   ;;  %s1780_s15 = smov 0  }
   0x7   :  { %s1782_s16 = smov 0   ;;  %s1784_s17 = smov 0  }
   0x8   :  { %s1786_s18 = smov 0   ;;  %s1788_s19 = smov 0  }
   0x9   :  { %s1790_s20 = smov 0   ;;  %s1792_s21 = smov 0  }
   0xa   :  { %s1794_s22 = smov 0  }
   0xb LB: > { %s31_s23 = sadd.s32 1, %s1738_s20  ;;  %p82_p1 = scmp.ne.s32.totalorder %s1726_s17, %s1722_s16  ;;  %s1746_s22 = sphi %s1794_s22, %s19_s22   ;;  %s1742_s21 = sphi %s1792_s21, %s2199_s21   ;;  %s1738_s20 = sphi %s1790_s20, %s2198_s20   ;;  %s1734_s19 = sphi %s1788_s19, %s2197_s19   ;;  %s1730_s18 = sphi %s1786_s18, %s2196_s18   ;;  %s1726_s17 = sphi %s1784_s17, %s2195_s17   ;;  %s1722_s16 = sphi %s1782_s16, %s2194_s16   ;;  %s1718_s15 = sphi %s1780_s15, %s2193_s15   ;;  %s1714_s14 = sphi %s1778_s14, %s2192_s14   ;;  %s1710_s13 = sphi %s1776_s13, %s2191_s13   ;;  %s1706_s12 = sphi %s1774_s12, %s2190_s12  }
   0xc   : > { %p1831_p0 = scmp.ge.s32.totalorder %s31_s23, 6  ;;  %p2167_p2 = scmp.eq.s32.totalorder %s1746_s22, 0 }
   0xd   : > { %p2166_p4 = scmp.lt.s32.totalorder %s1746_s22, 24  ;;  %s179_s27 = sand.u32 1, %s1726_s17  }
   0xe   : > { %s2201_s23 = smov (%p1831_p0, %s31_s23), 0  ;;  %p84_p3 = por %p2167_p2, %p82_p1 }
   0xf   : > { %s1336_s28 = smul.u32 768, %s179_s27  ;;  %s1215_s29 = sshll.u32 %s1742_s21, 1 }
  0x10   : > { %s1333_s30 = smul.u32 768, %s1738_s20  ;;  %p1852_p5 = pnand %p2166_p4, %p84_p3 }
  0x11   : > { %s183_s6 = scalar_lea.vmem [#allocation3], %s1336_s28  ;;  %s2174_s1 = sld [smem:[#allocation10_spill]] }
  0x12   : > { %s190_s5 = sadd.s32 %s1333_s30, %s1215_s29  ;;  %s193_s7 = sshll.u32 %s183_s6, 4  ;;  %s1856_s7 = int_to_ptr.vmem [resolvable:$true] %s193_s7 }
  0x13   : > { %s1217_s8 = sshll.u32 %s190_s5, 6  ;;  %s1864_s24 = scalar_lea.sflag [#allocation4], %s179_s27 }
  0x14   : > { %p1594_p8 = pneg %p1852_p5 }
  0x17   : > { %s1861_s11 = scalar_lea.hbm %s2174_s1, %s1217_s8  ;;  %s1597_s30 = scalar_lea.hbm %s2174_s1, 294912 }
  0x18   : > { %s1592_s26 = scalar_lea.hbm %s1861_s11, 12288  ;;  %p1598_p11 = scmp.lt.u32.totalorder %s1861_s11, %s2174_s1 }
  0x19   : > { %p1593_p7 = scmp.ne.s32.totalorder %s1861_s11, %s1592_s26  ;;  %p1599_p12 = scmp.lt.u32.totalorder %s1597_s30, %s1592_s26 }
  0x1a   : > { %p1601_p1 = scmp.lt.u32.totalorder %s1592_s26, %s1861_s11 }
  0x1b   : > { %p1595_p9 = pnand %p1594_p8, %p1593_p7  ;;  %p1600_p13 = por %p1599_p12, %p1598_p11 }
  0x1d   : > { %p1596_p10 = pneg %p1595_p9  ;;  %p1602_p3 = por %p1601_p1, %p1600_p13 }
  0x1f   : > { %p1603_p4 = pnand %p1602_p3, %p1596_p10 }
  0x21   : > { %1606 = shalt.err (!%p1603_p4)
}
  0x22   : > { %s1607_s27 = scalar_lea.vmem %s1856_s7, 12288  ;;  %s1748_s8 = smov [#allocation3]  }
  0x23   : > { %p1608_p7 = scmp.ne.s32.totalorder %s1856_s7, %s1607_s27  ;;  %s1612_s9 = sshll.u32 %s1748_s8, 4  ;;  %s1613_s9 = int_to_ptr.vmem [resolvable:$false] %s1612_s9 }
  0x24   : > { %s1614_s10 = scalar_lea.vmem %s1613_s9, 24576  ;;  %p1615_p6 = scmp.lt.s32.totalorder %s1856_s7, %s1613_s9 }
  0x25   : > { %p1610_p9 = pnand %p1608_p7, %p1594_p8  ;;  %p1616_p11 = scmp.lt.s32.totalorder %s1614_s10, %s1607_s27 }
  0x27   : > { %p1611_p2 = pneg %p1610_p9  ;;  %p1617_p12 = por %p1616_p11, %p1615_p6 }
  0x29   : > { %p1618_p13 = pnand %p1617_p12, %p1611_p2 }
  0x2b   : > { %1621 = shalt.err (!%p1618_p13)
}
  0x2c   : > { %s1749_s26 = smov 512   ;;  %s1750_s28 = smov 128  }
  0x2d   : > { %s1751_s29 = smov 8   ;;  %p220_p2 = scmp.lt.s32.totalorder %s1746_s22, 25 }
  0x2e   : > { %1345 = dma.hbm_to_vmem [thread:$0]  (!%p1852_p5), %s1861_s11, 12288, %s1856_s7, %s1864_s24, %s1749_s26, %s1750_s28, %s1751_s29  }
  0x2f   : > { %p2175_p4 = scmp.ge.s32.totalorder %s1746_s22, 1  ;;  %s1211_s5 = sadd.s32 4294967295, %s1746_s22  }
  0x30   : > { %s34_s6 = sadd.s32 1, %s1742_s21  ;;  %p88_p8 = scmp.ne.s32.totalorder %s1722_s16, %s1718_s15 }
  0x31   : > { %p1895_p6 = pnand %p2175_p4, %p220_p2  ;;  %s2203_s6 = smov (!%p1831_p0, %s34_s6), %s1742_s21 }
  0x32   : > { %p1906_p10 = scmp.eq.s32.totalorder %s1211_s5, 0  ;;  %p36_p5 = scmp.ge.s32.totalorder %s2203_s6, 4 }
  0x33   : > { %s101_s24 = sadd.s32 1, %s1714_s14  ;;  %p108_p3 = scmp.ne.s32.totalorder %s1714_s14, %s1710_s13 }
  0x34   : > { %p1913_p1 = por %p1906_p10, %p88_p8  ;;  %s2205_s6 = smov (%p36_p5, %s2203_s6), 0 }
  0x35   : > { %2179 = sst [smem:[#allocation9_spill]] %s2205_s6  ;;  %p2180_p0 = scmp.eq.s32.totalorder %s1746_s22, 0 }
  0x36   : > { %s2178_s7 = scalar_select %p1913_p1, 1, 0 }
  0x37   : > { %p1923_p7 = por %p108_p3, %p2180_p0  ;;  %p114_p9 = scmp.ne.s32.totalorder %s1710_s13, %s1706_s12 }
  0x38   : > { %s71_s25 = ssub.s32 %s1742_s21, %s2205_s6  ;;  %s203_s11 = sand.u32 1, %s1714_s14  }
  0x39   : > { %s2182_s27 = ssub.s32 %s1738_s20, %s2201_s23  ;;  %p99_p11 = scmp.eq.s32.totalorder %s71_s25, 0 }
  0x3a   : > { %s72_s8 = sor.u32 %s71_s25, %s2182_s27  ;;  %p1937_p13 = por %p114_p9, %p1906_p10 }
  0x3b   : > { %p73_p12 = scmp.eq.s32.totalorder %s72_s8, 0  ;;  %s2184_s26 = sadd.s32 1, %s1726_s17 }
  0x3c   : > { %s2183_s9 = scalar_select %p1937_p13, 1, 0 }
  0x3d   : > { %s1942_s10 = scalar_select %p99_p11, %s1714_s14, %s101_s24  }
  0x3e   : > { %s1947_s28 = scalar_select %p73_p12, %s1726_s17, %s2184_s26  }
  0x3f   : > { %s1218_s29 = sshll.u32 %s203_s11, 1  ;;  %s1334_s5 = sshll.u32 %s1742_s21, 5 }
  0x40   : > { %s1953_s6 = scalar_lea.hbm %s2164_s2, %s1334_s5  ;;  %s207_s4 = scalar_lea.vmem [#allocation5], %s1218_s29 }
  0x41   : > { %s215_s25 = sshll.u32 %s207_s4, 4  ;;  %p2185_p2 = scmp.lt.s32.totalorder %s1746_s22, 24  ;;  %s1955_s25 = int_to_ptr.vmem [resolvable:$true] %s215_s25 }
  0x42   : > { %s204_s27 = scalar_lea.sflag [#allocation6], %s203_s11  ;;  %s1622_s1 = scalar_lea.hbm %s1953_s6, 32 }
  0x43   : > { %p1961_p4 = pnand %p2185_p2, %p1923_p7  ;;  %p1623_p8 = scmp.ne.s32.totalorder %s1953_s6, %s1622_s1 }
  0x44   : > { %s1627_s15 = scalar_lea.hbm %s2164_s2, 128  ;;  %p1628_p0 = scmp.lt.u32.totalorder %s1953_s6, %s2164_s2 }
  0x45   : > { %p1624_p10 = pneg %p1961_p4  ;;  %p1629_p7 = scmp.lt.u32.totalorder %s1627_s15, %s1622_s1 }
  0x46   : > { %p1631_p11 = scmp.lt.u32.totalorder %s1622_s1, %s1953_s6 }
  0x47   : > { %p1625_p5 = pnand %p1624_p10, %p1623_p8  ;;  %p1630_p9 = por %p1629_p7, %p1628_p0 }
  0x49   : > { %p1626_p3 = pneg %p1625_p5  ;;  %p1632_p12 = por %p1631_p11, %p1630_p9 }
  0x4b   : > { %p1633_p2 = pnand %p1632_p12, %p1626_p3 }
  0x4d   : > { %1636 = shalt.err (!%p1633_p2)
}
  0x4e   : > { %s1637_s11 = scalar_lea.vmem %s1955_s25, 32  ;;  %s1752_s12 = smov [#allocation5]  }
  0x4f   : > { %p1638_p8 = scmp.ne.s32.totalorder %s1955_s25, %s1637_s11  ;;  %s1642_s4 = sshll.u32 %s1752_s12, 4  ;;  %s1643_s4 = int_to_ptr.vmem [resolvable:$false] %s1642_s4 }
  0x50   : > { %s1644_s8 = scalar_lea.vmem %s1643_s4, 64  ;;  %p1645_p1 = scmp.lt.s32.totalorder %s1955_s25, %s1643_s4 }
  0x51   : > { %p1640_p5 = pnand %p1638_p8, %p1624_p10  ;;  %p1646_p0 = scmp.lt.s32.totalorder %s1644_s8, %s1637_s11 }
  0x53   : > { %p1641_p13 = pneg %p1640_p5  ;;  %p1647_p7 = por %p1646_p0, %p1645_p1 }
  0x55   : > { %p1648_p9 = pnand %p1647_p7, %p1641_p13 }
  0x57   : > { %1651 = shalt.err (!%p1648_p9)
}
  0x58   : > { %1348 = dma.hbm_to_vmem [thread:$0]  (!%p1961_p4), %s1953_s6, 32, %s1955_s25, %s204_s27  }
  0x59   : > { %224 = sbr.rel (%p1895_p6) target bundleno = 472 (0x1d8), region = 32  ;;  %s226_s1 = sand.u32 (!%p1895_p6), 1, %s1722_s16  }
  0x5a   : > { %s1337_s26 = smul.u32 (!%p1895_p6), 768, %s226_s1  ;;  %s227_s15 = scalar_lea.sflag (!%p1895_p6), [#allocation4], %s226_s1 }
  0x5b   : > { %p2187_p10 = scmp.ne.s32.totalorder (!%p1895_p6), %s2178_s7, 0 }
  0x5c   : > { %s1993_s29 = scalar_lea.vmem (!%p1895_p6), [#allocation3], %s1337_s26 }
  0x60   : > { %1697 = dma.done.wait (%p2187_p10), %s227_s15, 12288  }
  0x61   : > { %1699 = vsyncadd (%p2187_p10), %s227_s15, 4294955008  ;;  %s235_s24 = sand.u32 1, %s1710_s13   ;;  %p2188_p6 = scmp.ne.s32.totalorder %s2183_s9, 0 }
  0x62   : > { %s2000_s5 = sshll.u32 %s235_s24, 1  ;;  %s236_s30 = scalar_lea.sflag [#allocation6], %s235_s24 }
  0x63   : > { %s239_s6 = scalar_lea.vmem [#allocation5], %s2000_s5 }
  0x64   : > { %1701 = dma.done.wait (%p2188_p6), %s236_s30, 32  }
  0x65   : > { %1703 = vsyncadd (%p2188_p6), %s236_s30, 4294967264  ;;  %s280_s25 = smul.u32 6, %s1730_s18  ;;  %s1224_s27 = sshll.u32 %s1734_s19, 1 }
  0x66   : > { %p296_p1 = scmp.lt.s32.totalorder %s1224_s27, 7  ;;  %p1226_p4 = scmp.ne.s32.totalorder %s1730_s18, 0 }
  0x67   : > { %p283_p13 = scmp.lt.s32.totalorder %s280_s25, 35  ;;  %v1753_v0 = vmov (!%p1226_p4), 0.0  }
  0x68   : > { %s2207_s27 = smov (!%p296_p1, %s1224_s27), 7  ;;  %306 = sbr.rel (%p1226_p4) target bundleno = 111 (0x6f), region = 44 }
  0x69   : > { %s2209_s25 = smov (!%p283_p13, %s280_s25), 35  ;;  %s1225_s7 = sshll.u32 %s2207_s27, 2  ;;  %307 = vst [vmem:[#allocation2] sm:$0xff] (!%p1226_p4), %v1753_v0  ;;  %308 = vst [vmem:[#allocation2 + $0x8] sm:$0xff] (!%p1226_p4), %v1753_v0 }
  0x6a   : > { %s1223_s11 = sshll.u32 %s2209_s25, 2  ;;  %s2012_s8 = scalar_lea.vmem %s2165_s3, %s1225_s7 }
  0x6b   : > { %s2017_s9 = scalar_lea.vmem %s2162_s0, %s1223_s11 }
  0x6f PF: > { %v1442_v1 = vld [vmem:[%s1993_s29 + $0x4] ss:$8 sps:$4 sm:$0xff]   ;;  %v1446_v3 = vld [vmem:[%s1993_s29] ss:$8 sps:$4 sm:$0xff]   ;;  %v1448_v5 = vld [vmem:[%s1993_s29 + $0x14] ss:$8 sps:$4 sm:$0xff]  }
  0x70   : > { %v1444_v2 = vld [vmem:[%s1993_s29 + $0x104] ss:$8 sps:$4 sm:$0xff]   ;;  %911 = vmatprep.subr.bf16.mxu0 %v1442_v1  ;;  %v1447_v4 = vld [vmem:[%s1993_s29 + $0x100] ss:$8 sps:$4 sm:$0xff]   ;;  %v1450_v6 = vld [vmem:[%s1993_s29 + $0x114] ss:$8 sps:$4 sm:$0xff]  }
  0x71   : > { %952 = vmatprep.subr.bf16.mxu1 %v1444_v2  ;;  %912 = vmatpush1.bf16.msra.mxu0 %v1446_v3  ;;  %v1452_v7 = vld [vmem:[%s1993_s29 + $0x10] ss:$8 sps:$4 sm:$0xff]   ;;  %v1454_v9 = vld [vmem:[%s1993_s29 + $0x24] ss:$8 sps:$4 sm:$0xff]   ;;  %v1458_v11 = vld [vmem:[%s1993_s29 + $0x20] ss:$8 sps:$4 sm:$0xff]  }
  0x72   : > { %953 = vmatpush1.bf16.msra.mxu1 %v1447_v4  ;;  %913 = vmatprep.subr.bf16.mxu0 %v1448_v5  ;;  %v1453_v8 = vld [vmem:[%s1993_s29 + $0x110] ss:$8 sps:$4 sm:$0xff]   ;;  %v1456_v10 = vld [vmem:[%s1993_s29 + $0x124] ss:$8 sps:$4 sm:$0xff]   ;;  %v1459_v12 = vld [vmem:[%s1993_s29 + $0x120] ss:$8 sps:$4 sm:$0xff]  }
  0x73   : > { %954 = vmatprep.subr.bf16.mxu1 %v1450_v6  ;;  %v1460_v13 = vld [vmem:[%s1993_s29 + $0x34] ss:$8 sps:$4 sm:$0xff]   ;;  %v1464_v15 = vld [vmem:[%s1993_s29 + $0x30] ss:$8 sps:$4 sm:$0xff]   ;;  %v1466_v17 = vld [vmem:[%s1993_s29 + $0x44] ss:$8 sps:$4 sm:$0xff]  }
  0x74   : > { %v1462_v14 = vld [vmem:[%s1993_s29 + $0x134] ss:$8 sps:$4 sm:$0xff]   ;;  %v1465_v16 = vld [vmem:[%s1993_s29 + $0x130] ss:$8 sps:$4 sm:$0xff]   ;;  %v1468_v18 = vld [vmem:[%s1993_s29 + $0x144] ss:$8 sps:$4 sm:$0xff]  }
  0x75   : > { %914 = vmatpush1.bf16.msra.mxu0 %v1452_v7  ;;  %v1470_v19 = vld [vmem:[%s1993_s29 + $0x40] ss:$8 sps:$4 sm:$0xff]   ;;  %v1472_v21 = vld [vmem:[%s1993_s29 + $0x54] ss:$8 sps:$4 sm:$0xff]   ;;  %v1476_v23 = vld [vmem:[%s1993_s29 + $0x50] ss:$8 sps:$4 sm:$0xff]  }
  0x76   : > { %955 = vmatpush1.bf16.msra.mxu1 %v1453_v8  ;;  %915 = vmatprep.subr.bf16.mxu0 %v1454_v9  ;;  %v1471_v20 = vld [vmem:[%s1993_s29 + $0x140] ss:$8 sps:$4 sm:$0xff]   ;;  %v1474_v22 = vld [vmem:[%s1993_s29 + $0x154] ss:$8 sps:$4 sm:$0xff]   ;;  %v1477_v24 = vld [vmem:[%s1993_s29 + $0x150] ss:$8 sps:$4 sm:$0xff]  }
  0x77   : > { %956 = vmatprep.subr.bf16.mxu1 %v1456_v10  ;;  %v1478_v25 = vld [vmem:[%s1993_s29 + $0x64] ss:$8 sps:$4 sm:$0xff]   ;;  %v1482_v27 = vld [vmem:[%s1993_s29 + $0x60] ss:$8 sps:$4 sm:$0xff]   ;;  %v1484_v29 = vld [vmem:[%s1993_s29 + $0x74] ss:$8 sps:$4 sm:$0xff]  }
  0x78   : > { %v1480_v26 = vld [vmem:[%s1993_s29 + $0x164] ss:$8 sps:$4 sm:$0xff]   ;;  %v1483_v28 = vld [vmem:[%s1993_s29 + $0x160] ss:$8 sps:$4 sm:$0xff]   ;;  %v1486_v30 = vld [vmem:[%s1993_s29 + $0x174] ss:$8 sps:$4 sm:$0xff]  }
  0x79   : > { %916 = vmatpush1.bf16.msra.mxu0 %v1458_v11  ;;  %v1488_v31 = vld [vmem:[%s1993_s29 + $0x70] ss:$8 sps:$4 sm:$0xff]   ;;  %v1490_v33 = vld [vmem:[%s1993_s29 + $0x84] ss:$8 sps:$4 sm:$0xff]   ;;  %v1494_v35 = vld [vmem:[%s1993_s29 + $0x80] ss:$8 sps:$4 sm:$0xff]  }
  0x7a   : > { %957 = vmatpush1.bf16.msra.mxu1 %v1459_v12  ;;  %917 = vmatprep.subr.bf16.mxu0 %v1460_v13  ;;  %v1489_v32 = vld [vmem:[%s1993_s29 + $0x170] ss:$8 sps:$4 sm:$0xff]   ;;  %v1492_v34 = vld [vmem:[%s1993_s29 + $0x184] ss:$8 sps:$4 sm:$0xff]   ;;  %v1495_v36 = vld [vmem:[%s1993_s29 + $0x180] ss:$8 sps:$4 sm:$0xff]  }
  0x7b   : > { %958 = vmatprep.subr.bf16.mxu1 %v1462_v14  ;;  %v1496_v37 = vld [vmem:[%s1993_s29 + $0x94] ss:$8 sps:$4 sm:$0xff]   ;;  %v1500_v39 = vld [vmem:[%s1993_s29 + $0x90] ss:$8 sps:$4 sm:$0xff]   ;;  %v1502_v41 = vld [vmem:[%s1993_s29 + $0xa4] ss:$8 sps:$4 sm:$0xff]  }
  0x7c   : > { %v1498_v38 = vld [vmem:[%s1993_s29 + $0x194] ss:$8 sps:$4 sm:$0xff]   ;;  %v1501_v40 = vld [vmem:[%s1993_s29 + $0x190] ss:$8 sps:$4 sm:$0xff]   ;;  %v1504_v42 = vld [vmem:[%s1993_s29 + $0x1a4] ss:$8 sps:$4 sm:$0xff]  }
  0x7d   : > { %918 = vmatpush1.bf16.msra.mxu0 %v1464_v15  ;;  %v1506_v43 = vld [vmem:[%s1993_s29 + $0xa0] ss:$8 sps:$4 sm:$0xff]   ;;  %v1508_v45 = vld [vmem:[%s1993_s29 + $0xb4] ss:$8 sps:$4 sm:$0xff]   ;;  %v1512_v50 = vld [vmem:[%s1993_s29 + $0xb0] ss:$8 sps:$4 sm:$0xff]  }
  0x7e   : > { %959 = vmatpush1.bf16.msra.mxu1 %v1465_v16  ;;  %919 = vmatprep.subr.bf16.mxu0 %v1466_v17  ;;  %v1507_v44 = vld [vmem:[%s1993_s29 + $0x1a0] ss:$8 sps:$4 sm:$0xff]   ;;  %v1510_v46 = vld [vmem:[%s1993_s29 + $0x1b4] ss:$8 sps:$4 sm:$0xff]   ;;  %v1513_v51 = vld [vmem:[%s1993_s29 + $0x1b0] ss:$8 sps:$4 sm:$0xff]  }
  0x7f   : > { %960 = vmatprep.subr.bf16.mxu1 %v1468_v18  ;;  %v311_v47 = vld [vmem:[%s2017_s9] sm:$0xff]  ;;  %v312_v49 = vld [vmem:[%s2017_s9 + $0x8] sm:$0xff]  ;;  %v1514_v53 = vld [vmem:[%s1993_s29 + $0xc4] ss:$8 sps:$4 sm:$0xff]   ;;  %p1329_p3 = scmp.ne.s32.totalorder %s1730_s18, 5 }
  0x80   : > { %v1228_v48 = vcombine.high %v311_v47, %v311_v47  ;;  %v1230_v52 = vcombine.high %v312_v49, %v312_v49  ;;  %v1516_v54 = vld [vmem:[%s1993_s29 + $0x1c4] ss:$8 sps:$4 sm:$0xff]   ;;  %v1518_v55 = vld [vmem:[%s1993_s29 + $0xc0] ss:$8 sps:$4 sm:$0xff]   ;;  %v1520_v57 = vld [vmem:[%s1993_s29 + $0xd4] ss:$8 sps:$4 sm:$0xff]   ;;  %v1227_v6 = vcombine.low %v311_v47, %v311_v47  ;;  %v1229_v7 = vcombine.low %v312_v49, %v312_v49 }
  0x81   : > { %920 = vmatpush1.bf16.msra.mxu0 %v1470_v19  ;;  %v1519_v56 = vld [vmem:[%s1993_s29 + $0x1c0] ss:$8 sps:$4 sm:$0xff]   ;;  %v1522_v58 = vld [vmem:[%s1993_s29 + $0x1d4] ss:$8 sps:$4 sm:$0xff]   ;;  %v1524_v59 = vld [vmem:[%s1993_s29 + $0xd0] ss:$8 sps:$4 sm:$0xff]  }
  0x82   : > { %961 = vmatpush1.bf16.msra.mxu1 %v1471_v20  ;;  %921 = vmatprep.subr.bf16.mxu0 %v1472_v21  ;;  %v1525_v60 = vld [vmem:[%s1993_s29 + $0x1d0] ss:$8 sps:$4 sm:$0xff]   ;;  %v1526_v61 = vld [vmem:[%s1993_s29 + $0xe4] ss:$8 sps:$4 sm:$0xff]   ;;  %v1530_v63 = vld [vmem:[%s1993_s29 + $0xe0] ss:$8 sps:$4 sm:$0xff]  }
  0x83   : > { %962 = vmatprep.subr.bf16.mxu1 %v1474_v22  ;;  %943 = vmatprep.mubr.bf16.mxu0 %v1228_v48  ;;  %v1528_v62 = vld [vmem:[%s1993_s29 + $0x1e4] ss:$8 sps:$4 sm:$0xff]   ;;  %v1531_v0 = vld [vmem:[%s1993_s29 + $0x1e0] ss:$8 sps:$4 sm:$0xff]   ;;  %v1532_v1 = vld [vmem:[%s1993_s29 + $0xf4] ss:$8 sps:$4 sm:$0xff]  }
  0x84   : > { %984 = vmatprep.mubr.bf16.mxu1 %v1230_v52  ;;  %v1534_v2 = vld [vmem:[%s1993_s29 + $0x1f4] ss:$8 sps:$4 sm:$0xff]   ;;  %v1536_v3 = vld [vmem:[%s1993_s29 + $0xf0] ss:$8 sps:$4 sm:$0xff]   ;;  %v1544_v5 = vld [vmem:[%s1993_s29 + $0x204] ss:$8 sps:$4 sm:$0xff]  }
  0x85   : > { %922 = vmatpush1.bf16.msra.mxu0 %v1476_v23  ;;  %v1537_v4 = vld [vmem:[%s1993_s29 + $0x1f0] ss:$8 sps:$4 sm:$0xff]   ;;  %v1542_v8 = vld [vmem:[%s1993_s29 + $0x200] ss:$8 sps:$4 sm:$0xff]   ;;  %v1547_v10 = vld [vmem:[%s1993_s29 + $0x214] ss:$8 sps:$4 sm:$0xff]  }
  0x86   : > { %963 = vmatpush1.bf16.msra.mxu1 %v1477_v24  ;;  %923 = vmatprep.subr.bf16.mxu0 %v1478_v25  ;;  %v2089_v9 = vld [vmem:[%s2017_s9 + $0x10] sm:$0xff]  ;;  %v1545_v12 = vld [vmem:[%s1993_s29 + $0x210] ss:$8 sps:$4 sm:$0xff]   ;;  %v1553_v15 = vld [vmem:[%s1993_s29 + $0x234] ss:$8 sps:$4 sm:$0xff]  }
  0x87   : > { %964 = vmatprep.subr.bf16.mxu1 %v1480_v26  ;;  %v1232_v11 = vcombine.high %v2089_v9, %v2089_v9  ;;  %v1550_v13 = vld [vmem:[%s1993_s29 + $0x224] ss:$8 sps:$4 sm:$0xff]   ;;  %v1548_v14 = vld [vmem:[%s1993_s29 + $0x220] ss:$8 sps:$4 sm:$0xff]   ;;  %v1551_v16 = vld [vmem:[%s1993_s29 + $0x230] ss:$8 sps:$4 sm:$0xff]  }
  0x88   : > { %v1556_v17 = vld [vmem:[%s1993_s29 + $0x244] ss:$8 sps:$4 sm:$0xff]   ;;  %v1554_v18 = vld [vmem:[%s1993_s29 + $0x240] ss:$8 sps:$4 sm:$0xff]   ;;  %v1559_v19 = vld [vmem:[%s1993_s29 + $0x254] ss:$8 sps:$4 sm:$0xff]  }
  0x89   : > { %924 = vmatpush1.bf16.msra.mxu0 %v1482_v27  ;;  %v1557_v20 = vld [vmem:[%s1993_s29 + $0x250] ss:$8 sps:$4 sm:$0xff]   ;;  %v1562_v21 = vld [vmem:[%s1993_s29 + $0x264] ss:$8 sps:$4 sm:$0xff]   ;;  %v1560_v22 = vld [vmem:[%s1993_s29 + $0x260] ss:$8 sps:$4 sm:$0xff]  }
  0x8a   : > { %965 = vmatpush1.bf16.msra.mxu1 %v1483_v28  ;;  %925 = vmatprep.subr.bf16.mxu0 %v1484_v29  ;;  %v1565_v23 = vld [vmem:[%s1993_s29 + $0x274] ss:$8 sps:$4 sm:$0xff]   ;;  %v1563_v24 = vld [vmem:[%s1993_s29 + $0x270] ss:$8 sps:$4 sm:$0xff]   ;;  %v1568_v25 = vld [vmem:[%s1993_s29 + $0x284] ss:$8 sps:$4 sm:$0xff]  }
  0x8b   : > { %966 = vmatprep.subr.bf16.mxu1 %v1486_v30  ;;  %v1566_v26 = vld [vmem:[%s1993_s29 + $0x280] ss:$8 sps:$4 sm:$0xff]   ;;  %v1571_v27 = vld [vmem:[%s1993_s29 + $0x294] ss:$8 sps:$4 sm:$0xff]   ;;  %v1569_v28 = vld [vmem:[%s1993_s29 + $0x290] ss:$8 sps:$4 sm:$0xff]  }
  0x8c   : > { %v1574_v29 = vld [vmem:[%s1993_s29 + $0x2a4] ss:$8 sps:$4 sm:$0xff]   ;;  %v1572_v30 = vld [vmem:[%s1993_s29 + $0x2a0] ss:$8 sps:$4 sm:$0xff]   ;;  %v309_v52 = vld [vmem:[#allocation2] sm:$0xff] }
  0x8d   : > { %926 = vmatpush1.bf16.msra.mxu0 %v1488_v31  ;;  %v1577_v31 = vld [vmem:[%s1993_s29 + $0x2b4] ss:$8 sps:$4 sm:$0xff]  }
  0x8e   : > { %967 = vmatpush1.bf16.msra.mxu1 %v1489_v32  ;;  %927 = vmatprep.subr.bf16.mxu0 %v1490_v33  ;;  %v1575_v32 = vld [vmem:[%s1993_s29 + $0x2b0] ss:$8 sps:$4 sm:$0xff]   ;;  %v1580_v33 = vld [vmem:[%s1993_s29 + $0x2c4] ss:$8 sps:$4 sm:$0xff]  }
  0x8f   : > { %968 = vmatprep.subr.bf16.mxu1 %v1492_v34  ;;  %v1578_v34 = vld [vmem:[%s1993_s29 + $0x2c0] ss:$8 sps:$4 sm:$0xff]  }
  0x91   : > { %928 = vmatpush1.bf16.msra.mxu0 %v1494_v35  ;;  %v1583_v35 = vld [vmem:[%s1993_s29 + $0x2d4] ss:$8 sps:$4 sm:$0xff]  }
  0x92   : > { %969 = vmatpush1.bf16.msra.mxu1 %v1495_v36  ;;  %929 = vmatprep.subr.bf16.mxu0 %v1496_v37  ;;  %v1581_v36 = vld [vmem:[%s1993_s29 + $0x2d0] ss:$8 sps:$4 sm:$0xff]   ;;  %v1586_v37 = vld [vmem:[%s1993_s29 + $0x2e4] ss:$8 sps:$4 sm:$0xff]  }
  0x93   : > { %970 = vmatprep.subr.bf16.mxu1 %v1498_v38  ;;  %v1584_v38 = vld [vmem:[%s1993_s29 + $0x2e0] ss:$8 sps:$4 sm:$0xff]  }
  0x95   : > { %930 = vmatpush1.bf16.msra.mxu0 %v1500_v39  ;;  %v1589_v39 = vld [vmem:[%s1993_s29 + $0x2f4] ss:$8 sps:$4 sm:$0xff]  }
  0x96   : > { %971 = vmatpush1.bf16.msra.mxu1 %v1501_v40  ;;  %931 = vmatprep.subr.bf16.mxu0 %v1502_v41  ;;  %v1587_v40 = vld [vmem:[%s1993_s29 + $0x2f0] ss:$8 sps:$4 sm:$0xff]   ;;  %v1231_v41 = vcombine.low %v2089_v9, %v2089_v9 }
  0x97   : > { %972 = vmatprep.subr.bf16.mxu1 %v1504_v42 }
  0x99   : > { %932 = vmatpush1.bf16.msra.mxu0 %v1506_v43 }
  0x9a   : > { %973 = vmatpush1.bf16.msra.mxu1 %v1507_v44  ;;  %933 = vmatprep.subr.bf16.mxu0 %v1508_v45 }
  0x9b   : > { %974 = vmatprep.subr.bf16.mxu1 %v1510_v46 }
  0x9d   : > { %934 = vmatpush1.bf16.msra.mxu0 %v1512_v50 }
  0x9e   : > { %975 = vmatpush1.bf16.msra.mxu1 %v1513_v51  ;;  %935 = vmatprep.subr.bf16.mxu0 %v1514_v53 }
  0x9f   : > { %976 = vmatprep.subr.bf16.mxu1 %v1516_v54 }
  0xa1   : > { %936 = vmatpush1.bf16.msra.mxu0 %v1518_v55  ;;  %v310_v55 = vld [vmem:[#allocation2 + $0x8] sm:$0xff] }
  0xa2   : > { %977 = vmatpush1.bf16.msra.mxu1 %v1519_v56  ;;  %937 = vmatprep.subr.bf16.mxu0 %v1520_v57 }
  0xa3   : > { %978 = vmatprep.subr.bf16.mxu1 %v1522_v58 }
  0xa5   : > { %938 = vmatpush1.bf16.msra.mxu0 %v1524_v59 }
  0xa6   : > { %979 = vmatpush1.bf16.msra.mxu1 %v1525_v60  ;;  %939 = vmatprep.subr.bf16.mxu0 %v1526_v61 }
  0xa7   : > { %980 = vmatprep.subr.bf16.mxu1 %v1528_v62  ;;  %v1046_v62 = vlaneseq (!%p1329_p3) }
  0xa9   : > { %940 = vmatpush1.bf16.msra.mxu0 %v1530_v63  ;;  %v1047_v63 = vshrl.u32 (!%p1329_p3), %v1046_v62, 7 }
  0xaa   : > { %981 = vmatpush1.bf16.msra.mxu1 %v1531_v0  ;;  %941 = vmatprep.subr.bf16.mxu0 %v1532_v1  ;;  %v1044_v0 = vld [vmem:[%s239_s6] sm:$0x3] (!%p1329_p3) }
  0xab   : > { %982 = vmatprep.subr.bf16.mxu1 %v1534_v2  ;;  %v1048_v1 = vsub.s32 (!%p1329_p3), 0, %v1047_v63  ;;  %v1052_v2 = vsub.s32 (!%p1329_p3), 1, %v1047_v63 }
  0xad   : > { %942 = vmatpush1.bf16.msra.mxu0 %v1536_v3 }
  0xae   : > { %983 = vmatpush1.bf16.msra.mxu1 %v1537_v4  ;;  %993 = vmatprep.subr.bf16.mxu0 %v1544_v5  ;;  %v1049_v5 = vrot.slane (!%p1329_p3), %v1044_v0, %v1048_v1 }
  0xb0   : > { %944 = vmatmul.mubr.bf16.vlgmr.msra.gmra.mrb[0].mxu0 %v1227_v6  ;;  %v1053_v6 = vrot.slane (!%p1329_p3), %v1044_v0, %v1052_v2 }
  0xb1   : > { %985 = vmatmul.mubr.bf16.vlgmr.msra.gmra.mrb[0].mxu1 %v1229_v7  ;;  %994 = vmatpush1.bf16.msra.mxu0 %v1542_v8 }
  0xb2   : > { %1025 = vmatprep.mubr.bf16.mxu0 %v1232_v11  ;;  %995 = vmatprep.subr.bf16.mxu0 %v1547_v10 }
  0xb5   : > { %996 = vmatpush1.bf16.msra.mxu0 %v1545_v12 }
  0xb6   : > { %997 = vmatprep.subr.bf16.mxu0 %v1550_v13 }
  0xb9   : > { %998 = vmatpush1.bf16.msra.mxu0 %v1548_v14 }
  0xba   : > { %999 = vmatprep.subr.bf16.mxu0 %v1553_v15 }
  0xbd   : > { %1000 = vmatpush1.bf16.msra.mxu0 %v1551_v16 }
  0xbe   : > { %1001 = vmatprep.subr.bf16.mxu0 %v1556_v17 }
  0xc1   : > { %1002 = vmatpush1.bf16.msra.mxu0 %v1554_v18 }
  0xc2   : > { %1003 = vmatprep.subr.bf16.mxu0 %v1559_v19 }
  0xc5   : > { %1004 = vmatpush1.bf16.msra.mxu0 %v1557_v20 }
  0xc6   : > { %1005 = vmatprep.subr.bf16.mxu0 %v1562_v21 }
  0xc9   : > { %1006 = vmatpush1.bf16.msra.mxu0 %v1560_v22 }
  0xca   : > { %1007 = vmatprep.subr.bf16.mxu0 %v1565_v23 }
  0xcd   : > { %1008 = vmatpush1.bf16.msra.mxu0 %v1563_v24 }
  0xce   : > { %1009 = vmatprep.subr.bf16.mxu0 %v1568_v25 }
  0xd1   : > { %1010 = vmatpush1.bf16.msra.mxu0 %v1566_v26 }
  0xd2   : > { %1011 = vmatprep.subr.bf16.mxu0 %v1571_v27 }
  0xd5   : > { %1012 = vmatpush1.bf16.msra.mxu0 %v1569_v28 }
  0xd6   : > { %1013 = vmatprep.subr.bf16.mxu0 %v1574_v29 }
  0xd9   : > { %1014 = vmatpush1.bf16.msra.mxu0 %v1572_v30 }
  0xda   : > { %1015 = vmatprep.subr.bf16.mxu0 %v1577_v31 }
  0xdd   : > { %1016 = vmatpush1.bf16.msra.mxu0 %v1575_v32 }
  0xde   : > { %1017 = vmatprep.subr.bf16.mxu0 %v1580_v33 }
  0xe1   : > { %1018 = vmatpush1.bf16.msra.mxu0 %v1578_v34 }
  0xe2   : > { %1019 = vmatprep.subr.bf16.mxu0 %v1583_v35 }
  0xe5   : > { %1020 = vmatpush1.bf16.msra.mxu0 %v1581_v36 }
  0xe6   : > { %1021 = vmatprep.subr.bf16.mxu0 %v1586_v37 }
  0xe9   : > { %1022 = vmatpush1.bf16.msra.mxu0 %v1584_v38 }
  0xea   : > { %1023 = vmatprep.subr.bf16.mxu0 %v1589_v39 }
  0xed   : > { %1024 = vmatpush1.bf16.msra.mxu0 %v1587_v40 }
  0xf0   : > { %1026 = vmatmul.mubr.bf16.vlgmr.msra.gmra.mrb[4].mxu0 %v1231_v41 }
 0x183   : > { %v945_v42 = vpop.f32.mrb[0].mxu0 }
 0x184   : > { %v986_v43 = vpop.f32.mrb[0].mxu1  ;;  %v947_v45 = vpop.f32.mrb[1].mxu0 }
 0x185   : > { %v987_v44 = vadd.f32 %v986_v43, %v945_v42  ;;  %v988_v46 = vpop.f32.mrb[1].mxu1  ;;  %v949_v48 = vpop.f32.mrb[2].mxu0 }
 0x186   : > { %v989_v47 = vadd.f32 %v988_v46, %v947_v45  ;;  %v990_v49 = vpop.f32.mrb[2].mxu1  ;;  %v950_v50 = vpop.f32.mrb[3].mxu0 }
 0x187   : > { %v991_v51 = vpop.f32.mrb[3].mxu1 }
 0x1c3   : > { %v1027_v53 = vpop.f32.mrb[4].mxu0  ;;  %1041 = sbr.rel (%p1329_p3) target bundleno = 472 (0x1d8), region = 48 }
 0x1c4   : > { %v1028_v54 = vadd.f32 %v1027_v53, %v987_v44  ;;  %v1029_v56 = vpop.f32.mrb[5].mxu0 }
 0x1c5   : > { %v1030_v57 = vadd.f32 %v1029_v56, %v989_v47  ;;  %v1031_v58 = vpop.f32.mrb[6].mxu0 }
 0x1c6   : > { %v1034_v59 = vadd.f32 %v1028_v54, %v309_v52  ;;  %v1032_v60 = vpop.f32.mrb[7].mxu0 }
 0x1c7   : > { %v1035_v61 = vadd.f32 %v1030_v57, %v310_v55 }
 0x1c8   : > { %1036 = vst [vmem:[#allocation2] sm:$0xff] %v1034_v59 }
 0x1c9   : > { %1037 = vst [vmem:[#allocation2 + $0x8] sm:$0xff] %v1035_v61 }
 0x1cf   : > { %v1042_v3 = vld [vmem:[#allocation2] sm:$0xff] }
 0x1d0   : > { %v1043_v4 = vld [vmem:[#allocation2 + $0x8] sm:$0xff]  ;;  %v1056_v7 = vadd.f32 %v1049_v5, %v1042_v3 }
 0x1d1   : > { %v1057_v8 = vadd.f32 %v1053_v6, %v1043_v4 }
 0x1d2   : > { %v1058_v9 = vmax.f32 %v1056_v7, 0.0 }
 0x1d3   : > { %v1059_v10 = vmax.f32 %v1057_v8, 0.0 }
 0x1d5   : > { %v1335_v11 = vpack.c.bf16 %v1059_v10, %v1058_v9 }
 0x1d7   : > { %1068 = vst [vmem:[%s2012_s8] sm:$0xff] %v1335_v11 }
 0x1d8 PF: > { %s19_s22 = sadd.s32 1, %s1746_s22   ;;  %s2189_s29 = sld [smem:[#allocation9_spill]] }
 0x1d9   : > { %p16_p11 = scmp.ge.s32.totalorder %s19_s22, 26   ;;  %s2190_s12 = smov %s1710_s13 }
 0x1da   : > { %s2191_s13 = smov %s1714_s14  ;;  %s2192_s14 = smov %s1942_s10 }
 0x1db   : > { %s2193_s15 = smov %s1722_s16  ;;  %s2194_s16 = smov %s1726_s17 }
 0x1dc   : > { %s2195_s17 = smov %s1947_s28  ;;  %s2196_s18 = smov %s1738_s20 }
 0x1dd   : > { %s2197_s19 = smov %s1742_s21  ;;  %s2198_s20 = smov %s2201_s23 }
 0x1de   : > { %s2199_s21 = smov %s2189_s29  ;;  %18 = sbr.rel (!%p16_p11) target bundleno = 11 (0xb), region = 96 }
 0x1e5   :  { %1099 = vsyncpa [#allocation4], 1 }
 0x1e6   :  { %1101 = vsyncpa [#allocation4 + $0x1], 1 }
 0x1e7   :  { %1102 = vsyncpa [#allocation6], 1 }
 0x1e8   :  { %1104 = vsyncpa [#allocation6 + $0x1], 1 }

</bundles_post_ra>
